<compile_context>
chip_gen: v7x
topology: tpu7x:2x2x1
jax: 0.10.0
libtpu: 0.0.40
codegen_flags: <defaults>
</compile_context>

<pallas_src>
import functools

import jax
import jax.numpy as jnp
from jax import lax
from jax.experimental import pallas as pl
from jax.experimental.pallas import tpu as pltpu


# ------------------------ fused GRU stack + FC kernel ------------------------
def fused_rnn_kernel(x_ref, h0_ref, *refs, T, B, H, num_layers):
    nlw = 4 * num_layers
    layer_refs = refs[:nlw]
    fc_w_ref = refs[nlw]
    fc_b_ref = refs[nlw + 1]
    logits_ref = refs[nlw + 2]
    h_final_ref = refs[nlw + 3]
    gi_scratch = refs[nlw + 4]      # (T*B, 3H) f32 — hoisted input projection
    seq_scratch = refs[nlw + 5]     # (T*B, H)  f32 — inter-layer activations

    layer_input = x_ref[...]        # (T*B, in) f32
    h_last = None
    for layer in range(num_layers):
        w_ih = layer_refs[4 * layer][...]          # (in, 3H)
        w_hh = layer_refs[4 * layer + 1][...]      # (H, 3H)
        bias_pre = layer_refs[4 * layer + 2][...]  # (1, 3H) = b_ih + [b_hr,b_hz,0]
        b_hn = layer_refs[4 * layer + 3][...]      # (1, H)

        # Hoisted input projection: ONE batched matmul for all T timesteps.
        gi_scratch[...] = (
            jnp.dot(layer_input, w_ih, preferred_element_type=jnp.float32)
            + bias_pre)

        is_last = layer == num_layers - 1

        def step(t, h_prev, *, _is_last=is_last, _w_hh=w_hh, _b_hn=b_hn):
            row = pl.multiple_of(t * B, B)
            gi = gi_scratch[pl.ds(row, B), :]                        # (B, 3H)
            gh = jnp.dot(h_prev, _w_hh, preferred_element_type=jnp.float32)
            r = jax.nn.sigmoid(gi[:, 0:H] + gh[:, 0:H])
            z = jax.nn.sigmoid(gi[:, H:2 * H] + gh[:, H:2 * H])
            n = jnp.tanh(gi[:, 2 * H:3 * H] + r * (gh[:, 2 * H:3 * H] + _b_hn))
            h_new = (1.0 - z) * n + z * h_prev
            if not _is_last:
                # Only intermediate layers need the full output sequence (it
                # becomes the next layer's input); it never leaves VMEM.
                seq_scratch[pl.ds(row, B), :] = h_new
            return h_new

        hT = lax.fori_loop(0, T, step, h0_ref[layer], unroll=True)
        h_final_ref[layer] = hT.astype(h_final_ref.dtype)   # once per layer
        h_last = hT
        if not is_last:
            layer_input = seq_scratch[...]

    # Fused FC head on the last timestep of the last layer (lane-dense V=128).
    logits_ref[...] = (
        jnp.dot(h_last, fc_w_ref[...], preferred_element_type=jnp.float32)
        + fc_b_ref[...]).astype(logits_ref.dtype)


def fused_rnn_call(x_flat, h0, layer_args, fc_w, fc_b, *, T, B):
    num_layers, _, H = h0.shape
    E = x_flat.shape[-1]
    V = fc_w.shape[-1]

    def full_spec(shape):
        # Full-array block at a single grid point (no tiling needed at these
        # sizes; with grid=(1,) nothing is double-buffered across steps).
        return pl.BlockSpec(shape, lambda i: (0,) * len(shape))

    in_specs = [full_spec((T * B, E)), full_spec((num_layers, B, H))]
    for layer in range(num_layers):
        in_size = E if layer == 0 else H
        in_specs += [full_spec((in_size, 3 * H)), full_spec((H, 3 * H)),
                     full_spec((1, 3 * H)), full_spec((1, H))]
    in_specs += [full_spec((H, V)), full_spec((1, V))]

    kernel = functools.partial(fused_rnn_kernel, T=T, B=B, H=H,
                               num_layers=num_layers)
    return pl.pallas_call(
        kernel,
        out_shape=(jax.ShapeDtypeStruct((B, V), jnp.float32),
                   jax.ShapeDtypeStruct((num_layers, B, H), jnp.float32)),
        grid_spec=pltpu.PrefetchScalarGridSpec(
            num_scalar_prefetch=0,
            grid=(1,),
            in_specs=in_specs,
            out_specs=[full_spec((B, V)), full_spec((num_layers, B, H))],
            scratch_shapes=[pltpu.VMEM((T * B, 3 * H), jnp.float32),
                            pltpu.VMEM((T * B, H), jnp.float32)],
        ),
        compiler_params=pltpu.CompilerParams(
            dimension_semantics=("arbitrary",)),
    )(x_flat, h0, *layer_args, fc_w, fc_b)


# ------------------------------ Full model ----------------------------------
def rnn_model_forward(params, x_tokens, h0):
    """Equivalent of RNNModel.forward(x, h).

    x_tokens: int32 (B, T), h0: f32 (num_layers, B, H)
    returns (logits (B, vocab), h_final (num_layers, B, H))
    """
    # Embedding gather (memory-bound glue, plain JAX).
    emb = params["embedding"][x_tokens]                       # (B, T, E)
    B, T, _ = emb.shape
    E = emb.shape[-1]
    x_flat = (jnp.transpose(emb, (1, 0, 2))                   # time-major (T, B, E)
              .reshape(T * B, E).astype(jnp.float32))

    H = h0.shape[-1]
    layer_args = []
    for (w_ih, w_hh, b_ih, b_hh) in params["gru"]:
        # Offline bias fold: b_hr/b_hz move into the hoisted input projection;
        # only b_hn must stay inside the recurrence (r * (h @ W_hn + b_hn)).
        bias_pre = (b_ih + jnp.concatenate(
            [b_hh[:H], b_hh[H:2 * H], jnp.zeros((H,), b_hh.dtype)])
        ).reshape(1, 3 * H)
        layer_args += [w_ih, w_hh, bias_pre, b_hh[2 * H:].reshape(1, H)]

    return fused_rnn_call(x_flat, h0.astype(jnp.float32), layer_args,
                          params["fc_w"], params["fc_b"].reshape(1, -1),
                          T=T, B=B)


# ---------------------------- Pure-JAX reference -----------------------------
def gru_layer_ref(x_seq, h0, w_ih, w_hh, b_ih, b_hh):
    H = h0.shape[-1]

    def step(h, x):
        gi = x @ w_ih + b_ih
        gh = h @ w_hh + b_hh
        r = jax.nn.sigmoid(gi[:, :H] + gh[:, :H])
        z = jax.nn.sigmoid(gi[:, H:2 * H] + gh[:, H:2 * H])
        n = jnp.tanh(gi[:, 2 * H:] + r * gh[:, 2 * H:])
        h_new = (1.0 - z) * n + z * h
        return h_new, h_new

    hT, outs = lax.scan(step, h0, x_seq)
    return outs, hT


def rnn_model_ref(params, x_tokens, h0):
    emb = params["embedding"][x_tokens]
    x_seq = jnp.transpose(emb, (1, 0, 2)).astype(jnp.float32)
    num_layers = h0.shape[0]
    h_finals = []
    layer_in = x_seq
    for layer in range(num_layers):
        w_ih, w_hh, b_ih, b_hh = params["gru"][layer]
        layer_in, hT = gru_layer_ref(layer_in, h0[layer], w_ih, w_hh, b_ih, b_hh)
        h_finals.append(hT)
    logits = layer_in[-1] @ params["fc_w"] + params["fc_b"]
    return logits, jnp.stack(h_finals, axis=0)


# --------------------------------- Main --------------------------------------
if __name__ == "__main__":
    # Small, shape-consistent config.
    vocab_size, embed_size, hidden_size, num_layers = 128, 32, 32, 2
    B, T = 8, 8

    key = jax.random.PRNGKey(0)
    keys = jax.random.split(key, 16)
    kidx = iter(range(16))
    bound = 1.0 / jnp.sqrt(jnp.float32(hidden_size))

    def unif(k, shape):
        return jax.random.uniform(k, shape, jnp.float32, -bound, bound)

    params = {
        "embedding": jax.random.normal(keys[next(kidx)],
                                       (vocab_size, embed_size), jnp.float32),
        "gru": [],
        "fc_w": unif(keys[next(kidx)], (hidden_size, vocab_size)),
        "fc_b": unif(keys[next(kidx)], (vocab_size,)),
    }
    for layer in range(num_layers):
        in_size = embed_size if layer == 0 else hidden_size
        # PyTorch stores (3H, in); we store transposed (in, 3H), gate order [r,z,n].
        w_ih = unif(keys[next(kidx)], (in_size, 3 * hidden_size))
        w_hh = unif(keys[next(kidx)], (hidden_size, 3 * hidden_size))
        b_ih = unif(keys[next(kidx)], (3 * hidden_size,))
        b_hh = unif(keys[next(kidx)], (3 * hidden_size,))
        params["gru"].append((w_ih, w_hh, b_ih, b_hh))

    x_tokens = jax.random.randint(keys[next(kidx)], (B, T), 0, vocab_size,
                                  dtype=jnp.int32)
    h0 = jax.random.normal(keys[next(kidx)], (num_layers, B, hidden_size),
                           jnp.float32)

    logits, h_final = rnn_model_forward(params, x_tokens, h0)
    logits = jax.block_until_ready(logits)
    h_final = jax.block_until_ready(h_final)

    # Sanity check against a pure-JAX reference.
    ref_logits, ref_h = rnn_model_ref(params, x_tokens, h0)
    assert logits.shape == (B, vocab_size)
    assert h_final.shape == (num_layers, B, hidden_size)
    assert jnp.allclose(logits, ref_logits, atol=1e-2, rtol=1e-2)
    assert jnp.allclose(h_final, ref_h, atol=1e-2, rtol=1e-2)

    print("KERNEL_OK")
</pallas_src>

<mosaic_0001>
module attributes {stable_mosaic.version = 11 : i64} {
  func.func @fused_rnn_kernel(%arg0: i32, %arg1: memref<64x32xf32, #tpu.memory_space<vmem>>, %arg2: memref<2x8x32xf32, #tpu.memory_space<vmem>>, %arg3: memref<32x96xf32, #tpu.memory_space<vmem>>, %arg4: memref<32x96xf32, #tpu.memory_space<vmem>>, %arg5: memref<1x96xf32, #tpu.memory_space<vmem>>, %arg6: memref<1x32xf32, #tpu.memory_space<vmem>>, %arg7: memref<32x96xf32, #tpu.memory_space<vmem>>, %arg8: memref<32x96xf32, #tpu.memory_space<vmem>>, %arg9: memref<1x96xf32, #tpu.memory_space<vmem>>, %arg10: memref<1x32xf32, #tpu.memory_space<vmem>>, %arg11: memref<32x128xf32, #tpu.memory_space<vmem>>, %arg12: memref<1x128xf32, #tpu.memory_space<vmem>>, %arg13: memref<8x128xf32, #tpu.memory_space<vmem>>, %arg14: memref<2x8x32xf32, #tpu.memory_space<vmem>>, %arg15: memref<64x96xf32, #tpu.memory_space<vmem>>, %arg16: memref<64x32xf32, #tpu.memory_space<vmem>>) attributes {dimension_semantics = [#tpu.dimension_semantics<arbitrary>], iteration_bounds = array<i64: 1>, scalar_prefetch = 0 : i64, scratch_operands = 2 : i64, tpu.core_type = #tpu.core_type<tc>, window_params = [{pipeline_mode = #tpu.pipeline_mode<synchronous>, transform_indices = @transform_0, window_bounds = array<i64: 64, 32>}, {pipeline_mode = #tpu.pipeline_mode<synchronous>, transform_indices = @transform_1, window_bounds = array<i64: 2, 8, 32>}, {pipeline_mode = #tpu.pipeline_mode<synchronous>, transform_indices = @transform_2, window_bounds = array<i64: 32, 96>}, {pipeline_mode = #tpu.pipeline_mode<synchronous>, transform_indices = @transform_3, window_bounds = array<i64: 32, 96>}, {pipeline_mode = #tpu.pipeline_mode<synchronous>, transform_indices = @transform_4, window_bounds = array<i64: 1, 96>}, {pipeline_mode = #tpu.pipeline_mode<synchronous>, transform_indices = @transform_5, window_bounds = array<i64: 1, 32>}, {pipeline_mode = #tpu.pipeline_mode<synchronous>, transform_indices = @transform_6, window_bounds = array<i64: 32, 96>}, {pipeline_mode = #tpu.pipeline_mode<synchronous>, transform_indices = @transform_7, window_bounds = array<i64: 32, 96>}, {pipeline_mode = #tpu.pipeline_mode<synchronous>, transform_indices = @transform_8, window_bounds = array<i64: 1, 96>}, {pipeline_mode = #tpu.pipeline_mode<synchronous>, transform_indices = @transform_9, window_bounds = array<i64: 1, 32>}, {pipeline_mode = #tpu.pipeline_mode<synchronous>, transform_indices = @transform_10, window_bounds = array<i64: 32, 128>}, {pipeline_mode = #tpu.pipeline_mode<synchronous>, transform_indices = @transform_11, window_bounds = array<i64: 1, 128>}, {pipeline_mode = #tpu.pipeline_mode<synchronous>, transform_indices = @transform_12, window_bounds = array<i64: 8, 128>}, {pipeline_mode = #tpu.pipeline_mode<synchronous>, transform_indices = @transform_13, window_bounds = array<i64: 2, 8, 32>}]} {
    %c0 = arith.constant 0 : index
    %c0_0 = arith.constant 0 : index
    %0 = vector.load %arg1[%c0, %c0_0] : memref<64x32xf32, #tpu.memory_space<vmem>>, vector<64x32xf32>
    %c0_1 = arith.constant 0 : index
    %c0_2 = arith.constant 0 : index
    %1 = vector.load %arg3[%c0_1, %c0_2] : memref<32x96xf32, #tpu.memory_space<vmem>>, vector<32x96xf32>
    %c0_3 = arith.constant 0 : index
    %c0_4 = arith.constant 0 : index
    %2 = vector.load %arg4[%c0_3, %c0_4] : memref<32x96xf32, #tpu.memory_space<vmem>>, vector<32x96xf32>
    %c0_5 = arith.constant 0 : index
    %c0_6 = arith.constant 0 : index
    %3 = vector.load %arg5[%c0_5, %c0_6] : memref<1x96xf32, #tpu.memory_space<vmem>>, vector<1x96xf32>
    %c0_7 = arith.constant 0 : index
    %c0_8 = arith.constant 0 : index
    %4 = vector.load %arg6[%c0_7, %c0_8] : memref<1x32xf32, #tpu.memory_space<vmem>>, vector<1x32xf32>
    %cst = arith.constant dense<0.000000e+00> : vector<64x96xf32>
    %5 = tpu.matmul %0, %1, %cst {dimension_numbers = #tpu.dot_dimension_numbers<[1], [0], [0], [1], [0, 0, 1, 1], [], []>} : vector<64x32xf32>, vector<32x96xf32>, vector<64x96xf32> -> vector<64x96xf32>
    %6 = vector.broadcast %3 : vector<1x96xf32> to vector<64x96xf32>
    %7 = arith.addf %5, %6 : vector<64x96xf32>
    %c0_9 = arith.constant 0 : index
    %c0_10 = arith.constant 0 : index
    %8 = vector.load %arg15[%c0_9, %c0_10] : memref<64x96xf32, #tpu.memory_space<vmem>>, vector<64x96xf32>
    tpu.vector_store %arg15[%c0_9, %c0_10], %7 {strides = array<i32>} : memref<64x96xf32, #tpu.memory_space<vmem>>, vector<64x96xf32>,
    %c0_11 = arith.constant 0 : index
    %c0_12 = arith.constant 0 : index
    %c0_13 = arith.constant 0 : index
    %9 = vector.load %arg2[%c0_11, %c0_12, %c0_13] : memref<2x8x32xf32, #tpu.memory_space<vmem>>, vector<1x8x32xf32>
    %10 = vector.shape_cast %9 : vector<1x8x32xf32> to vector<8x32xf32>
    %c0_i32 = arith.constant 0 : i32
    %c8_i32 = arith.constant 8 : i32
    %11 = arith.muli %c0_i32, %c8_i32 : i32
    %12 = tpu.assume_multiple %11, 8 : i32
    %13 = arith.index_cast %12 : i32 to index
    %c0_14 = arith.constant 0 : index
    %14 = vector.load %arg15[%13, %c0_14] : memref<64x96xf32, #tpu.memory_space<vmem>>, vector<8x96xf32>
    %cst_15 = arith.constant dense<0.000000e+00> : vector<8x96xf32>
    %15 = tpu.matmul %10, %2, %cst_15 {dimension_numbers = #tpu.dot_dimension_numbers<[1], [0], [0], [1], [0, 0, 1, 1], [], []>} : vector<8x32xf32>, vector<32x96xf32>, vector<8x96xf32> -> vector<8x96xf32>
    %16 = vector.extract_strided_slice %14 {offsets = [0, 0], sizes = [8, 32], strides = [1, 1]} : vector<8x96xf32> to vector<8x32xf32>
    %17 = vector.extract_strided_slice %15 {offsets = [0, 0], sizes = [8, 32], strides = [1, 1]} : vector<8x96xf32> to vector<8x32xf32>
    %18 = arith.addf %16, %17 : vector<8x32xf32>
    %19 = arith.negf %18 : vector<8x32xf32>
    %20 = math.exp %19 : vector<8x32xf32>
    %cst_16 = arith.constant 1.000000e+00 : f32
    %21 = vector.broadcast %cst_16 : f32 to vector<8x32xf32>
    %22 = arith.addf %21, %20 : vector<8x32xf32>
    %23 = arith.divf %21, %22 : vector<8x32xf32>
    %24 = vector.extract_strided_slice %14 {offsets = [0, 32], sizes = [8, 32], strides = [1, 1]} : vector<8x96xf32> to vector<8x32xf32>
    %25 = vector.extract_strided_slice %15 {offsets = [0, 32], sizes = [8, 32], strides = [1, 1]} : vector<8x96xf32> to vector<8x32xf32>
    %26 = arith.addf %24, %25 : vector<8x32xf32>
    %27 = arith.negf %26 : vector<8x32xf32>
    %28 = math.exp %27 : vector<8x32xf32>
    %cst_17 = arith.constant 1.000000e+00 : f32
    %29 = vector.broadcast %cst_17 : f32 to vector<8x32xf32>
    %30 = arith.addf %29, %28 : vector<8x32xf32>
    %31 = arith.divf %29, %30 : vector<8x32xf32>
    %32 = vector.extract_strided_slice %14 {offsets = [0, 64], sizes = [8, 32], strides = [1, 1]} : vector<8x96xf32> to vector<8x32xf32>
    %33 = vector.extract_strided_slice %15 {offsets = [0, 64], sizes = [8, 32], strides = [1, 1]} : vector<8x96xf32> to vector<8x32xf32>
    %34 = vector.broadcast %4 : vector<1x32xf32> to vector<8x32xf32>
    %35 = arith.addf %33, %34 : vector<8x32xf32>
    %36 = arith.mulf %23, %35 : vector<8x32xf32>
    %37 = arith.addf %32, %36 : vector<8x32xf32>
    %38 = math.tanh %37 : vector<8x32xf32>
    %cst_18 = arith.constant 1.000000e+00 : f32
    %39 = vector.broadcast %cst_18 : f32 to vector<8x32xf32>
    %40 = arith.subf %39, %31 : vector<8x32xf32>
    %41 = arith.mulf %40, %38 : vector<8x32xf32>
    %42 = arith.mulf %31, %10 : vector<8x32xf32>
    %43 = arith.addf %41, %42 : vector<8x32xf32>
    %44 = arith.index_cast %12 : i32 to index
    %c0_19 = arith.constant 0 : index
    %45 = vector.load %arg16[%44, %c0_19] : memref<64x32xf32, #tpu.memory_space<vmem>>, vector<8x32xf32>
    tpu.vector_store %arg16[%44, %c0_19], %43 {strides = array<i32>} : memref<64x32xf32, #tpu.memory_space<vmem>>, vector<8x32xf32>,
    %c1_i32 = arith.constant 1 : i32
    %c8_i32_20 = arith.constant 8 : i32
    %46 = arith.muli %c1_i32, %c8_i32_20 : i32
    %47 = tpu.assume_multiple %46, 8 : i32
    %48 = arith.index_cast %47 : i32 to index
    %c0_21 = arith.constant 0 : index
    %49 = vector.load %arg15[%48, %c0_21] : memref<64x96xf32, #tpu.memory_space<vmem>>, vector<8x96xf32>
    %cst_22 = arith.constant dense<0.000000e+00> : vector<8x96xf32>
    %50 = tpu.matmul %43, %2, %cst_22 {dimension_numbers = #tpu.dot_dimension_numbers<[1], [0], [0], [1], [0, 0, 1, 1], [], []>} : vector<8x32xf32>, vector<32x96xf32>, vector<8x96xf32> -> vector<8x96xf32>
    %51 = vector.extract_strided_slice %49 {offsets = [0, 0], sizes = [8, 32], strides = [1, 1]} : vector<8x96xf32> to vector<8x32xf32>
    %52 = vector.extract_strided_slice %50 {offsets = [0, 0], sizes = [8, 32], strides = [1, 1]} : vector<8x96xf32> to vector<8x32xf32>
    %53 = arith.addf %51, %52 : vector<8x32xf32>
    %54 = arith.negf %53 : vector<8x32xf32>
    %55 = math.exp %54 : vector<8x32xf32>
    %cst_23 = arith.constant 1.000000e+00 : f32
    %56 = vector.broadcast %cst_23 : f32 to vector<8x32xf32>
    %57 = arith.addf %56, %55 : vector<8x32xf32>
    %58 = arith.divf %56, %57 : vector<8x32xf32>
    %59 = vector.extract_strided_slice %49 {offsets = [0, 32], sizes = [8, 32], strides = [1, 1]} : vector<8x96xf32> to vector<8x32xf32>
    %60 = vector.extract_strided_slice %50 {offsets = [0, 32], sizes = [8, 32], strides = [1, 1]} : vector<8x96xf32> to vector<8x32xf32>
    %61 = arith.addf %59, %60 : vector<8x32xf32>
    %62 = arith.negf %61 : vector<8x32xf32>
    %63 = math.exp %62 : vector<8x32xf32>
    %cst_24 = arith.constant 1.000000e+00 : f32
    %64 = vector.broadcast %cst_24 : f32 to vector<8x32xf32>
    %65 = arith.addf %64, %63 : vector<8x32xf32>
    %66 = arith.divf %64, %65 : vector<8x32xf32>
    %67 = vector.extract_strided_slice %49 {offsets = [0, 64], sizes = [8, 32], strides = [1, 1]} : vector<8x96xf32> to vector<8x32xf32>
    %68 = vector.extract_strided_slice %50 {offsets = [0, 64], sizes = [8, 32], strides = [1, 1]} : vector<8x96xf32> to vector<8x32xf32>
    %69 = vector.broadcast %4 : vector<1x32xf32> to vector<8x32xf32>
    %70 = arith.addf %68, %69 : vector<8x32xf32>
    %71 = arith.mulf %58, %70 : vector<8x32xf32>
    %72 = arith.addf %67, %71 : vector<8x32xf32>
    %73 = math.tanh %72 : vector<8x32xf32>
    %cst_25 = arith.constant 1.000000e+00 : f32
    %74 = vector.broadcast %cst_25 : f32 to vector<8x32xf32>
    %75 = arith.subf %74, %66 : vector<8x32xf32>
    %76 = arith.mulf %75, %73 : vector<8x32xf32>
    %77 = arith.mulf %66, %43 : vector<8x32xf32>
    %78 = arith.addf %76, %77 : vector<8x32xf32>
    %79 = arith.index_cast %47 : i32 to index
    %c0_26 = arith.constant 0 : index
    %80 = vector.load %arg16[%79, %c0_26] : memref<64x32xf32, #tpu.memory_space<vmem>>, vector<8x32xf32>
    tpu.vector_store %arg16[%79, %c0_26], %78 {strides = array<i32>} : memref<64x32xf32, #tpu.memory_space<vmem>>, vector<8x32xf32>,
    %c2_i32 = arith.constant 2 : i32
    %c8_i32_27 = arith.constant 8 : i32
    %81 = arith.muli %c2_i32, %c8_i32_27 : i32
    %82 = tpu.assume_multiple %81, 8 : i32
    %83 = arith.index_cast %82 : i32 to index
    %c0_28 = arith.constant 0 : index
    %84 = vector.load %arg15[%83, %c0_28] : memref<64x96xf32, #tpu.memory_space<vmem>>, vector<8x96xf32>
    %cst_29 = arith.constant dense<0.000000e+00> : vector<8x96xf32>
    %85 = tpu.matmul %78, %2, %cst_29 {dimension_numbers = #tpu.dot_dimension_numbers<[1], [0], [0], [1], [0, 0, 1, 1], [], []>} : vector<8x32xf32>, vector<32x96xf32>, vector<8x96xf32> -> vector<8x96xf32>
    %86 = vector.extract_strided_slice %84 {offsets = [0, 0], sizes = [8, 32], strides = [1, 1]} : vector<8x96xf32> to vector<8x32xf32>
    %87 = vector.extract_strided_slice %85 {offsets = [0, 0], sizes = [8, 32], strides = [1, 1]} : vector<8x96xf32> to vector<8x32xf32>
    %88 = arith.addf %86, %87 : vector<8x32xf32>
    %89 = arith.negf %88 : vector<8x32xf32>
    %90 = math.exp %89 : vector<8x32xf32>
    %cst_30 = arith.constant 1.000000e+00 : f32
    %91 = vector.broadcast %cst_30 : f32 to vector<8x32xf32>
    %92 = arith.addf %91, %90 : vector<8x32xf32>
    %93 = arith.divf %91, %92 : vector<8x32xf32>
    %94 = vector.extract_strided_slice %84 {offsets = [0, 32], sizes = [8, 32], strides = [1, 1]} : vector<8x96xf32> to vector<8x32xf32>
    %95 = vector.extract_strided_slice %85 {offsets = [0, 32], sizes = [8, 32], strides = [1, 1]} : vector<8x96xf32> to vector<8x32xf32>
    %96 = arith.addf %94, %95 : vector<8x32xf32>
    %97 = arith.negf %96 : vector<8x32xf32>
    %98 = math.exp %97 : vector<8x32xf32>
    %cst_31 = arith.constant 1.000000e+00 : f32
    %99 = vector.broadcast %cst_31 : f32 to vector<8x32xf32>
    %100 = arith.addf %99, %98 : vector<8x32xf32>
    %101 = arith.divf %99, %100 : vector<8x32xf32>
    %102 = vector.extract_strided_slice %84 {offsets = [0, 64], sizes = [8, 32], strides = [1, 1]} : vector<8x96xf32> to vector<8x32xf32>
    %103 = vector.extract_strided_slice %85 {offsets = [0, 64], sizes = [8, 32], strides = [1, 1]} : vector<8x96xf32> to vector<8x32xf32>
    %104 = vector.broadcast %4 : vector<1x32xf32> to vector<8x32xf32>
    %105 = arith.addf %103, %104 : vector<8x32xf32>
    %106 = arith.mulf %93, %105 : vector<8x32xf32>
    %107 = arith.addf %102, %106 : vector<8x32xf32>
    %108 = math.tanh %107 : vector<8x32xf32>
    %cst_32 = arith.constant 1.000000e+00 : f32
    %109 = vector.broadcast %cst_32 : f32 to vector<8x32xf32>
    %110 = arith.subf %109, %101 : vector<8x32xf32>
    %111 = arith.mulf %110, %108 : vector<8x32xf32>
    %112 = arith.mulf %101, %78 : vector<8x32xf32>
    %113 = arith.addf %111, %112 : vector<8x32xf32>
    %114 = arith.index_cast %82 : i32 to index
    %c0_33 = arith.constant 0 : index
    %115 = vector.load %arg16[%114, %c0_33] : memref<64x32xf32, #tpu.memory_space<vmem>>, vector<8x32xf32>
    tpu.vector_store %arg16[%114, %c0_33], %113 {strides = array<i32>} : memref<64x32xf32, #tpu.memory_space<vmem>>, vector<8x32xf32>,
    %c3_i32 = arith.constant 3 : i32
    %c8_i32_34 = arith.constant 8 : i32
    %116 = arith.muli %c3_i32, %c8_i32_34 : i32
    %117 = tpu.assume_multiple %116, 8 : i32
    %118 = arith.index_cast %117 : i32 to index
    %c0_35 = arith.constant 0 : index
    %119 = vector.load %arg15[%118, %c0_35] : memref<64x96xf32, #tpu.memory_space<vmem>>, vector<8x96xf32>
    %cst_36 = arith.constant dense<0.000000e+00> : vector<8x96xf32>
    %120 = tpu.matmul %113, %2, %cst_36 {dimension_numbers = #tpu.dot_dimension_numbers<[1], [0], [0], [1], [0, 0, 1, 1], [], []>} : vector<8x32xf32>, vector<32x96xf32>, vector<8x96xf32> -> vector<8x96xf32>
    %121 = vector.extract_strided_slice %119 {offsets = [0, 0], sizes = [8, 32], strides = [1, 1]} : vector<8x96xf32> to vector<8x32xf32>
    %122 = vector.extract_strided_slice %120 {offsets = [0, 0], sizes = [8, 32], strides = [1, 1]} : vector<8x96xf32> to vector<8x32xf32>
    %123 = arith.addf %121, %122 : vector<8x32xf32>
    %124 = arith.negf %123 : vector<8x32xf32>
    %125 = math.exp %124 : vector<8x32xf32>
    %cst_37 = arith.constant 1.000000e+00 : f32
    %126 = vector.broadcast %cst_37 : f32 to vector<8x32xf32>
    %127 = arith.addf %126, %125 : vector<8x32xf32>
    %128 = arith.divf %126, %127 : vector<8x32xf32>
    %129 = vector.extract_strided_slice %119 {offsets = [0, 32], sizes = [8, 32], strides = [1, 1]} : vector<8x96xf32> to vector<8x32xf32>
    %130 = vector.extract_strided_slice %120 {offsets = [0, 32], sizes = [8, 32], strides = [1, 1]} : vector<8x96xf32> to vector<8x32xf32>
    %131 = arith.addf %129, %130 : vector<8x32xf32>
    %132 = arith.negf %131 : vector<8x32xf32>
    %133 = math.exp %132 : vector<8x32xf32>
    %cst_38 = arith.constant 1.000000e+00 : f32
    %134 = vector.broadcast %cst_38 : f32 to vector<8x32xf32>
    %135 = arith.addf %134, %133 : vector<8x32xf32>
    %136 = arith.divf %134, %135 : vector<8x32xf32>
    %137 = vector.extract_strided_slice %119 {offsets = [0, 64], sizes = [8, 32], strides = [1, 1]} : vector<8x96xf32> to vector<8x32xf32>
    %138 = vector.extract_strided_slice %120 {offsets = [0, 64], sizes = [8, 32], strides = [1, 1]} : vector<8x96xf32> to vector<8x32xf32>
    %139 = vector.broadcast %4 : vector<1x32xf32> to vector<8x32xf32>
    %140 = arith.addf %138, %139 : vector<8x32xf32>
    %141 = arith.mulf %128, %140 : vector<8x32xf32>
    %142 = arith.addf %137, %141 : vector<8x32xf32>
    %143 = math.tanh %142 : vector<8x32xf32>
    %cst_39 = arith.constant 1.000000e+00 : f32
    %144 = vector.broadcast %cst_39 : f32 to vector<8x32xf32>
    %145 = arith.subf %144, %136 : vector<8x32xf32>
    %146 = arith.mulf %145, %143 : vector<8x32xf32>
    %147 = arith.mulf %136, %113 : vector<8x32xf32>
    %148 = arith.addf %146, %147 : vector<8x32xf32>
    %149 = arith.index_cast %117 : i32 to index
    %c0_40 = arith.constant 0 : index
    %150 = vector.load %arg16[%149, %c0_40] : memref<64x32xf32, #tpu.memory_space<vmem>>, vector<8x32xf32>
    tpu.vector_store %arg16[%149, %c0_40], %148 {strides = array<i32>} : memref<64x32xf32, #tpu.memory_space<vmem>>, vector<8x32xf32>,
    %c4_i32 = arith.constant 4 : i32
    %c8_i32_41 = arith.constant 8 : i32
    %151 = arith.muli %c4_i32, %c8_i32_41 : i32
    %152 = tpu.assume_multiple %151, 8 : i32
    %153 = arith.index_cast %152 : i32 to index
    %c0_42 = arith.constant 0 : index
    %154 = vector.load %arg15[%153, %c0_42] : memref<64x96xf32, #tpu.memory_space<vmem>>, vector<8x96xf32>
    %cst_43 = arith.constant dense<0.000000e+00> : vector<8x96xf32>
    %155 = tpu.matmul %148, %2, %cst_43 {dimension_numbers = #tpu.dot_dimension_numbers<[1], [0], [0], [1], [0, 0, 1, 1], [], []>} : vector<8x32xf32>, vector<32x96xf32>, vector<8x96xf32> -> vector<8x96xf32>
    %156 = vector.extract_strided_slice %154 {offsets = [0, 0], sizes = [8, 32], strides = [1, 1]} : vector<8x96xf32> to vector<8x32xf32>
    %157 = vector.extract_strided_slice %155 {offsets = [0, 0], sizes = [8, 32], strides = [1, 1]} : vector<8x96xf32> to vector<8x32xf32>
    %158 = arith.addf %156, %157 : vector<8x32xf32>
    %159 = arith.negf %158 : vector<8x32xf32>
    %160 = math.exp %159 : vector<8x32xf32>
    %cst_44 = arith.constant 1.000000e+00 : f32
    %161 = vector.broadcast %cst_44 : f32 to vector<8x32xf32>
    %162 = arith.addf %161, %160 : vector<8x32xf32>
    %163 = arith.divf %161, %162 : vector<8x32xf32>
    %164 = vector.extract_strided_slice %154 {offsets = [0, 32], sizes = [8, 32], strides = [1, 1]} : vector<8x96xf32> to vector<8x32xf32>
    %165 = vector.extract_strided_slice %155 {offsets = [0, 32], sizes = [8, 32], strides = [1, 1]} : vector<8x96xf32> to vector<8x32xf32>
    %166 = arith.addf %164, %165 : vector<8x32xf32>
    %167 = arith.negf %166 : vector<8x32xf32>
    %168 = math.exp %167 : vector<8x32xf32>
    %cst_45 = arith.constant 1.000000e+00 : f32
    %169 = vector.broadcast %cst_45 : f32 to vector<8x32xf32>
    %170 = arith.addf %169, %168 : vector<8x32xf32>
    %171 = arith.divf %169, %170 : vector<8x32xf32>
    %172 = vector.extract_strided_slice %154 {offsets = [0, 64], sizes = [8, 32], strides = [1, 1]} : vector<8x96xf32> to vector<8x32xf32>
    %173 = vector.extract_strided_slice %155 {offsets = [0, 64], sizes = [8, 32], strides = [1, 1]} : vector<8x96xf32> to vector<8x32xf32>
    %174 = vector.broadcast %4 : vector<1x32xf32> to vector<8x32xf32>
    %175 = arith.addf %173, %174 : vector<8x32xf32>
    %176 = arith.mulf %163, %175 : vector<8x32xf32>
    %177 = arith.addf %172, %176 : vector<8x32xf32>
    %178 = math.tanh %177 : vector<8x32xf32>
    %cst_46 = arith.constant 1.000000e+00 : f32
    %179 = vector.broadcast %cst_46 : f32 to vector<8x32xf32>
    %180 = arith.subf %179, %171 : vector<8x32xf32>
    %181 = arith.mulf %180, %178 : vector<8x32xf32>
    %182 = arith.mulf %171, %148 : vector<8x32xf32>
    %183 = arith.addf %181, %182 : vector<8x32xf32>
    %184 = arith.index_cast %152 : i32 to index
    %c0_47 = arith.constant 0 : index
    %185 = vector.load %arg16[%184, %c0_47] : memref<64x32xf32, #tpu.memory_space<vmem>>, vector<8x32xf32>
    tpu.vector_store %arg16[%184, %c0_47], %183 {strides = array<i32>} : memref<64x32xf32, #tpu.memory_space<vmem>>, vector<8x32xf32>,
    %c5_i32 = arith.constant 5 : i32
    %c8_i32_48 = arith.constant 8 : i32
    %186 = arith.muli %c5_i32, %c8_i32_48 : i32
    %187 = tpu.assume_multiple %186, 8 : i32
    %188 = arith.index_cast %187 : i32 to index
    %c0_49 = arith.constant 0 : index
    %189 = vector.load %arg15[%188, %c0_49] : memref<64x96xf32, #tpu.memory_space<vmem>>, vector<8x96xf32>
    %cst_50 = arith.constant dense<0.000000e+00> : vector<8x96xf32>
    %190 = tpu.matmul %183, %2, %cst_50 {dimension_numbers = #tpu.dot_dimension_numbers<[1], [0], [0], [1], [0, 0, 1, 1], [], []>} : vector<8x32xf32>, vector<32x96xf32>, vector<8x96xf32> -> vector<8x96xf32>
    %191 = vector.extract_strided_slice %189 {offsets = [0, 0], sizes = [8, 32], strides = [1, 1]} : vector<8x96xf32> to vector<8x32xf32>
    %192 = vector.extract_strided_slice %190 {offsets = [0, 0], sizes = [8, 32], strides = [1, 1]} : vector<8x96xf32> to vector<8x32xf32>
    %193 = arith.addf %191, %192 : vector<8x32xf32>
    %194 = arith.negf %193 : vector<8x32xf32>
    %195 = math.exp %194 : vector<8x32xf32>
    %cst_51 = arith.constant 1.000000e+00 : f32
    %196 = vector.broadcast %cst_51 : f32 to vector<8x32xf32>
    %197 = arith.addf %196, %195 : vector<8x32xf32>
    %198 = arith.divf %196, %197 : vector<8x32xf32>
    %199 = vector.extract_strided_slice %189 {offsets = [0, 32], sizes = [8, 32], strides = [1, 1]} : vector<8x96xf32> to vector<8x32xf32>
    %200 = vector.extract_strided_slice %190 {offsets = [0, 32], sizes = [8, 32], strides = [1, 1]} : vector<8x96xf32> to vector<8x32xf32>
    %201 = arith.addf %199, %200 : vector<8x32xf32>
    %202 = arith.negf %201 : vector<8x32xf32>
    %203 = math.exp %202 : vector<8x32xf32>
    %cst_52 = arith.constant 1.000000e+00 : f32
    %204 = vector.broadcast %cst_52 : f32 to vector<8x32xf32>
    %205 = arith.addf %204, %203 : vector<8x32xf32>
    %206 = arith.divf %204, %205 : vector<8x32xf32>
    %207 = vector.extract_strided_slice %189 {offsets = [0, 64], sizes = [8, 32], strides = [1, 1]} : vector<8x96xf32> to vector<8x32xf32>
    %208 = vector.extract_strided_slice %190 {offsets = [0, 64], sizes = [8, 32], strides = [1, 1]} : vector<8x96xf32> to vector<8x32xf32>
    %209 = vector.broadcast %4 : vector<1x32xf32> to vector<8x32xf32>
    %210 = arith.addf %208, %209 : vector<8x32xf32>
    %211 = arith.mulf %198, %210 : vector<8x32xf32>
    %212 = arith.addf %207, %211 : vector<8x32xf32>
    %213 = math.tanh %212 : vector<8x32xf32>
    %cst_53 = arith.constant 1.000000e+00 : f32
    %214 = vector.broadcast %cst_53 : f32 to vector<8x32xf32>
    %215 = arith.subf %214, %206 : vector<8x32xf32>
    %216 = arith.mulf %215, %213 : vector<8x32xf32>
    %217 = arith.mulf %206, %183 : vector<8x32xf32>
    %218 = arith.addf %216, %217 : vector<8x32xf32>
    %219 = arith.index_cast %187 : i32 to index
    %c0_54 = arith.constant 0 : index
    %220 = vector.load %arg16[%219, %c0_54] : memref<64x32xf32, #tpu.memory_space<vmem>>, vector<8x32xf32>
    tpu.vector_store %arg16[%219, %c0_54], %218 {strides = array<i32>} : memref<64x32xf32, #tpu.memory_space<vmem>>, vector<8x32xf32>,
    %c6_i32 = arith.constant 6 : i32
    %c8_i32_55 = arith.constant 8 : i32
    %221 = arith.muli %c6_i32, %c8_i32_55 : i32
    %222 = tpu.assume_multiple %221, 8 : i32
    %223 = arith.index_cast %222 : i32 to index
    %c0_56 = arith.constant 0 : index
    %224 = vector.load %arg15[%223, %c0_56] : memref<64x96xf32, #tpu.memory_space<vmem>>, vector<8x96xf32>
    %cst_57 = arith.constant dense<0.000000e+00> : vector<8x96xf32>
    %225 = tpu.matmul %218, %2, %cst_57 {dimension_numbers = #tpu.dot_dimension_numbers<[1], [0], [0], [1], [0, 0, 1, 1], [], []>} : vector<8x32xf32>, vector<32x96xf32>, vector<8x96xf32> -> vector<8x96xf32>
    %226 = vector.extract_strided_slice %224 {offsets = [0, 0], sizes = [8, 32], strides = [1, 1]} : vector<8x96xf32> to vector<8x32xf32>
    %227 = vector.extract_strided_slice %225 {offsets = [0, 0], sizes = [8, 32], strides = [1, 1]} : vector<8x96xf32> to vector<8x32xf32>
    %228 = arith.addf %226, %227 : vector<8x32xf32>
    %229 = arith.negf %228 : vector<8x32xf32>
    %230 = math.exp %229 : vector<8x32xf32>
    %cst_58 = arith.constant 1.000000e+00 : f32
    %231 = vector.broadcast %cst_58 : f32 to vector<8x32xf32>
    %232 = arith.addf %231, %230 : vector<8x32xf32>
    %233 = arith.divf %231, %232 : vector<8x32xf32>
    %234 = vector.extract_strided_slice %224 {offsets = [0, 32], sizes = [8, 32], strides = [1, 1]} : vector<8x96xf32> to vector<8x32xf32>
    %235 = vector.extract_strided_slice %225 {offsets = [0, 32], sizes = [8, 32], strides = [1, 1]} : vector<8x96xf32> to vector<8x32xf32>
    %236 = arith.addf %234, %235 : vector<8x32xf32>
    %237 = arith.negf %236 : vector<8x32xf32>
    %238 = math.exp %237 : vector<8x32xf32>
    %cst_59 = arith.constant 1.000000e+00 : f32
    %239 = vector.broadcast %cst_59 : f32 to vector<8x32xf32>
    %240 = arith.addf %239, %238 : vector<8x32xf32>
    %241 = arith.divf %239, %240 : vector<8x32xf32>
    %242 = vector.extract_strided_slice %224 {offsets = [0, 64], sizes = [8, 32], strides = [1, 1]} : vector<8x96xf32> to vector<8x32xf32>
    %243 = vector.extract_strided_slice %225 {offsets = [0, 64], sizes = [8, 32], strides = [1, 1]} : vector<8x96xf32> to vector<8x32xf32>
    %244 = vector.broadcast %4 : vector<1x32xf32> to vector<8x32xf32>
    %245 = arith.addf %243, %244 : vector<8x32xf32>
    %246 = arith.mulf %233, %245 : vector<8x32xf32>
    %247 = arith.addf %242, %246 : vector<8x32xf32>
    %248 = math.tanh %247 : vector<8x32xf32>
    %cst_60 = arith.constant 1.000000e+00 : f32
    %249 = vector.broadcast %cst_60 : f32 to vector<8x32xf32>
    %250 = arith.subf %249, %241 : vector<8x32xf32>
    %251 = arith.mulf %250, %248 : vector<8x32xf32>
    %252 = arith.mulf %241, %218 : vector<8x32xf32>
    %253 = arith.addf %251, %252 : vector<8x32xf32>
    %254 = arith.index_cast %222 : i32 to index
    %c0_61 = arith.constant 0 : index
    %255 = vector.load %arg16[%254, %c0_61] : memref<64x32xf32, #tpu.memory_space<vmem>>, vector<8x32xf32>
    tpu.vector_store %arg16[%254, %c0_61], %253 {strides = array<i32>} : memref<64x32xf32, #tpu.memory_space<vmem>>, vector<8x32xf32>,
    %c7_i32 = arith.constant 7 : i32
    %c8_i32_62 = arith.constant 8 : i32
    %256 = arith.muli %c7_i32, %c8_i32_62 : i32
    %257 = tpu.assume_multiple %256, 8 : i32
    %258 = arith.index_cast %257 : i32 to index
    %c0_63 = arith.constant 0 : index
    %259 = vector.load %arg15[%258, %c0_63] : memref<64x96xf32, #tpu.memory_space<vmem>>, vector<8x96xf32>
    %cst_64 = arith.constant dense<0.000000e+00> : vector<8x96xf32>
    %260 = tpu.matmul %253, %2, %cst_64 {dimension_numbers = #tpu.dot_dimension_numbers<[1], [0], [0], [1], [0, 0, 1, 1], [], []>} : vector<8x32xf32>, vector<32x96xf32>, vector<8x96xf32> -> vector<8x96xf32>
    %261 = vector.extract_strided_slice %259 {offsets = [0, 0], sizes = [8, 32], strides = [1, 1]} : vector<8x96xf32> to vector<8x32xf32>
    %262 = vector.extract_strided_slice %260 {offsets = [0, 0], sizes = [8, 32], strides = [1, 1]} : vector<8x96xf32> to vector<8x32xf32>
    %263 = arith.addf %261, %262 : vector<8x32xf32>
    %264 = arith.negf %263 : vector<8x32xf32>
    %265 = math.exp %264 : vector<8x32xf32>
    %cst_65 = arith.constant 1.000000e+00 : f32
    %266 = vector.broadcast %cst_65 : f32 to vector<8x32xf32>
    %267 = arith.addf %266, %265 : vector<8x32xf32>
    %268 = arith.divf %266, %267 : vector<8x32xf32>
    %269 = vector.extract_strided_slice %259 {offsets = [0, 32], sizes = [8, 32], strides = [1, 1]} : vector<8x96xf32> to vector<8x32xf32>
    %270 = vector.extract_strided_slice %260 {offsets = [0, 32], sizes = [8, 32], strides = [1, 1]} : vector<8x96xf32> to vector<8x32xf32>
    %271 = arith.addf %269, %270 : vector<8x32xf32>
    %272 = arith.negf %271 : vector<8x32xf32>
    %273 = math.exp %272 : vector<8x32xf32>
    %cst_66 = arith.constant 1.000000e+00 : f32
    %274 = vector.broadcast %cst_66 : f32 to vector<8x32xf32>
    %275 = arith.addf %274, %273 : vector<8x32xf32>
    %276 = arith.divf %274, %275 : vector<8x32xf32>
    %277 = vector.extract_strided_slice %259 {offsets = [0, 64], sizes = [8, 32], strides = [1, 1]} : vector<8x96xf32> to vector<8x32xf32>
    %278 = vector.extract_strided_slice %260 {offsets = [0, 64], sizes = [8, 32], strides = [1, 1]} : vector<8x96xf32> to vector<8x32xf32>
    %279 = vector.broadcast %4 : vector<1x32xf32> to vector<8x32xf32>
    %280 = arith.addf %278, %279 : vector<8x32xf32>
    %281 = arith.mulf %268, %280 : vector<8x32xf32>
    %282 = arith.addf %277, %281 : vector<8x32xf32>
    %283 = math.tanh %282 : vector<8x32xf32>
    %cst_67 = arith.constant 1.000000e+00 : f32
    %284 = vector.broadcast %cst_67 : f32 to vector<8x32xf32>
    %285 = arith.subf %284, %276 : vector<8x32xf32>
    %286 = arith.mulf %285, %283 : vector<8x32xf32>
    %287 = arith.mulf %276, %253 : vector<8x32xf32>
    %288 = arith.addf %286, %287 : vector<8x32xf32>
    %289 = arith.index_cast %257 : i32 to index
    %c0_68 = arith.constant 0 : index
    %290 = vector.load %arg16[%289, %c0_68] : memref<64x32xf32, #tpu.memory_space<vmem>>, vector<8x32xf32>
    tpu.vector_store %arg16[%289, %c0_68], %288 {strides = array<i32>} : memref<64x32xf32, #tpu.memory_space<vmem>>, vector<8x32xf32>,
    %c8_i32_69 = arith.constant 8 : i32
    %c0_70 = arith.constant 0 : index
    %c0_71 = arith.constant 0 : index
    %c0_72 = arith.constant 0 : index
    %291 = vector.load %arg14[%c0_70, %c0_71, %c0_72] : memref<2x8x32xf32, #tpu.memory_space<vmem>>, vector<1x8x32xf32>
    %292 = vector.shape_cast %291 : vector<1x8x32xf32> to vector<8x32xf32>
    %293 = vector.shape_cast %288 : vector<8x32xf32> to vector<1x8x32xf32>
    tpu.vector_store %arg14[%c0_70, %c0_71, %c0_72], %293 {strides = array<i32>} : memref<2x8x32xf32, #tpu.memory_space<vmem>>, vector<1x8x32xf32>,
    %c0_73 = arith.constant 0 : index
    %c0_74 = arith.constant 0 : index
    %294 = vector.load %arg16[%c0_73, %c0_74] : memref<64x32xf32, #tpu.memory_space<vmem>>, vector<64x32xf32>
    %c0_75 = arith.constant 0 : index
    %c0_76 = arith.constant 0 : index
    %295 = vector.load %arg7[%c0_75, %c0_76] : memref<32x96xf32, #tpu.memory_space<vmem>>, vector<32x96xf32>
    %c0_77 = arith.constant 0 : index
    %c0_78 = arith.constant 0 : index
    %296 = vector.load %arg8[%c0_77, %c0_78] : memref<32x96xf32, #tpu.memory_space<vmem>>, vector<32x96xf32>
    %c0_79 = arith.constant 0 : index
    %c0_80 = arith.constant 0 : index
    %297 = vector.load %arg9[%c0_79, %c0_80] : memref<1x96xf32, #tpu.memory_space<vmem>>, vector<1x96xf32>
    %c0_81 = arith.constant 0 : index
    %c0_82 = arith.constant 0 : index
    %298 = vector.load %arg10[%c0_81, %c0_82] : memref<1x32xf32, #tpu.memory_space<vmem>>, vector<1x32xf32>
    %cst_83 = arith.constant dense<0.000000e+00> : vector<64x96xf32>
    %299 = tpu.matmul %294, %295, %cst_83 {dimension_numbers = #tpu.dot_dimension_numbers<[1], [0], [0], [1], [0, 0, 1, 1], [], []>} : vector<64x32xf32>, vector<32x96xf32>, vector<64x96xf32> -> vector<64x96xf32>
    %300 = vector.broadcast %297 : vector<1x96xf32> to vector<64x96xf32>
    %301 = arith.addf %299, %300 : vector<64x96xf32>
    %c0_84 = arith.constant 0 : index
    %c0_85 = arith.constant 0 : index
    %302 = vector.load %arg15[%c0_84, %c0_85] : memref<64x96xf32, #tpu.memory_space<vmem>>, vector<64x96xf32>
    tpu.vector_store %arg15[%c0_84, %c0_85], %301 {strides = array<i32>} : memref<64x96xf32, #tpu.memory_space<vmem>>, vector<64x96xf32>,
    %c1 = arith.constant 1 : index
    %c0_86 = arith.constant 0 : index
    %c0_87 = arith.constant 0 : index
    %303 = vector.load %arg2[%c1, %c0_86, %c0_87] : memref<2x8x32xf32, #tpu.memory_space<vmem>>, vector<1x8x32xf32>
    %304 = vector.shape_cast %303 : vector<1x8x32xf32> to vector<8x32xf32>
    %c0_i32_88 = arith.constant 0 : i32
    %c8_i32_89 = arith.constant 8 : i32
    %305 = arith.muli %c0_i32_88, %c8_i32_89 : i32
    %306 = tpu.assume_multiple %305, 8 : i32
    %307 = arith.index_cast %306 : i32 to index
    %c0_90 = arith.constant 0 : index
    %308 = vector.load %arg15[%307, %c0_90] : memref<64x96xf32, #tpu.memory_space<vmem>>, vector<8x96xf32>
    %cst_91 = arith.constant dense<0.000000e+00> : vector<8x96xf32>
    %309 = tpu.matmul %304, %296, %cst_91 {dimension_numbers = #tpu.dot_dimension_numbers<[1], [0], [0], [1], [0, 0, 1, 1], [], []>} : vector<8x32xf32>, vector<32x96xf32>, vector<8x96xf32> -> vector<8x96xf32>
    %310 = vector.extract_strided_slice %308 {offsets = [0, 0], sizes = [8, 32], strides = [1, 1]} : vector<8x96xf32> to vector<8x32xf32>
    %311 = vector.extract_strided_slice %309 {offsets = [0, 0], sizes = [8, 32], strides = [1, 1]} : vector<8x96xf32> to vector<8x32xf32>
    %312 = arith.addf %310, %311 : vector<8x32xf32>
    %313 = arith.negf %312 : vector<8x32xf32>
    %314 = math.exp %313 : vector<8x32xf32>
    %cst_92 = arith.constant 1.000000e+00 : f32
    %315 = vector.broadcast %cst_92 : f32 to vector<8x32xf32>
    %316 = arith.addf %315, %314 : vector<8x32xf32>
    %317 = arith.divf %315, %316 : vector<8x32xf32>
    %318 = vector.extract_strided_slice %308 {offsets = [0, 32], sizes = [8, 32], strides = [1, 1]} : vector<8x96xf32> to vector<8x32xf32>
    %319 = vector.extract_strided_slice %309 {offsets = [0, 32], sizes = [8, 32], strides = [1, 1]} : vector<8x96xf32> to vector<8x32xf32>
    %320 = arith.addf %318, %319 : vector<8x32xf32>
    %321 = arith.negf %320 : vector<8x32xf32>
    %322 = math.exp %321 : vector<8x32xf32>
    %cst_93 = arith.constant 1.000000e+00 : f32
    %323 = vector.broadcast %cst_93 : f32 to vector<8x32xf32>
    %324 = arith.addf %323, %322 : vector<8x32xf32>
    %325 = arith.divf %323, %324 : vector<8x32xf32>
    %326 = vector.extract_strided_slice %308 {offsets = [0, 64], sizes = [8, 32], strides = [1, 1]} : vector<8x96xf32> to vector<8x32xf32>
    %327 = vector.extract_strided_slice %309 {offsets = [0, 64], sizes = [8, 32], strides = [1, 1]} : vector<8x96xf32> to vector<8x32xf32>
    %328 = vector.broadcast %298 : vector<1x32xf32> to vector<8x32xf32>
    %329 = arith.addf %327, %328 : vector<8x32xf32>
    %330 = arith.mulf %317, %329 : vector<8x32xf32>
    %331 = arith.addf %326, %330 : vector<8x32xf32>
    %332 = math.tanh %331 : vector<8x32xf32>
    %cst_94 = arith.constant 1.000000e+00 : f32
    %333 = vector.broadcast %cst_94 : f32 to vector<8x32xf32>
    %334 = arith.subf %333, %325 : vector<8x32xf32>
    %335 = arith.mulf %334, %332 : vector<8x32xf32>
    %336 = arith.mulf %325, %304 : vector<8x32xf32>
    %337 = arith.addf %335, %336 : vector<8x32xf32>
    %c1_i32_95 = arith.constant 1 : i32
    %c8_i32_96 = arith.constant 8 : i32
    %338 = arith.muli %c1_i32_95, %c8_i32_96 : i32
    %339 = tpu.assume_multiple %338, 8 : i32
    %340 = arith.index_cast %339 : i32 to index
    %c0_97 = arith.constant 0 : index
    %341 = vector.load %arg15[%340, %c0_97] : memref<64x96xf32, #tpu.memory_space<vmem>>, vector<8x96xf32>
    %cst_98 = arith.constant dense<0.000000e+00> : vector<8x96xf32>
    %342 = tpu.matmul %337, %296, %cst_98 {dimension_numbers = #tpu.dot_dimension_numbers<[1], [0], [0], [1], [0, 0, 1, 1], [], []>} : vector<8x32xf32>, vector<32x96xf32>, vector<8x96xf32> -> vector<8x96xf32>
    %343 = vector.extract_strided_slice %341 {offsets = [0, 0], sizes = [8, 32], strides = [1, 1]} : vector<8x96xf32> to vector<8x32xf32>
    %344 = vector.extract_strided_slice %342 {offsets = [0, 0], sizes = [8, 32], strides = [1, 1]} : vector<8x96xf32> to vector<8x32xf32>
    %345 = arith.addf %343, %344 : vector<8x32xf32>
    %346 = arith.negf %345 : vector<8x32xf32>
    %347 = math.exp %346 : vector<8x32xf32>
    %cst_99 = arith.constant 1.000000e+00 : f32
    %348 = vector.broadcast %cst_99 : f32 to vector<8x32xf32>
    %349 = arith.addf %348, %347 : vector<8x32xf32>
    %350 = arith.divf %348, %349 : vector<8x32xf32>
    %351 = vector.extract_strided_slice %341 {offsets = [0, 32], sizes = [8, 32], strides = [1, 1]} : vector<8x96xf32> to vector<8x32xf32>
    %352 = vector.extract_strided_slice %342 {offsets = [0, 32], sizes = [8, 32], strides = [1, 1]} : vector<8x96xf32> to vector<8x32xf32>
    %353 = arith.addf %351, %352 : vector<8x32xf32>
    %354 = arith.negf %353 : vector<8x32xf32>
    %355 = math.exp %354 : vector<8x32xf32>
    %cst_100 = arith.constant 1.000000e+00 : f32
    %356 = vector.broadcast %cst_100 : f32 to vector<8x32xf32>
    %357 = arith.addf %356, %355 : vector<8x32xf32>
    %358 = arith.divf %356, %357 : vector<8x32xf32>
    %359 = vector.extract_strided_slice %341 {offsets = [0, 64], sizes = [8, 32], strides = [1, 1]} : vector<8x96xf32> to vector<8x32xf32>
    %360 = vector.extract_strided_slice %342 {offsets = [0, 64], sizes = [8, 32], strides = [1, 1]} : vector<8x96xf32> to vector<8x32xf32>
    %361 = vector.broadcast %298 : vector<1x32xf32> to vector<8x32xf32>
    %362 = arith.addf %360, %361 : vector<8x32xf32>
    %363 = arith.mulf %350, %362 : vector<8x32xf32>
    %364 = arith.addf %359, %363 : vector<8x32xf32>
    %365 = math.tanh %364 : vector<8x32xf32>
    %cst_101 = arith.constant 1.000000e+00 : f32
    %366 = vector.broadcast %cst_101 : f32 to vector<8x32xf32>
    %367 = arith.subf %366, %358 : vector<8x32xf32>
    %368 = arith.mulf %367, %365 : vector<8x32xf32>
    %369 = arith.mulf %358, %337 : vector<8x32xf32>
    %370 = arith.addf %368, %369 : vector<8x32xf32>
    %c2_i32_102 = arith.constant 2 : i32
    %c8_i32_103 = arith.constant 8 : i32
    %371 = arith.muli %c2_i32_102, %c8_i32_103 : i32
    %372 = tpu.assume_multiple %371, 8 : i32
    %373 = arith.index_cast %372 : i32 to index
    %c0_104 = arith.constant 0 : index
    %374 = vector.load %arg15[%373, %c0_104] : memref<64x96xf32, #tpu.memory_space<vmem>>, vector<8x96xf32>
    %cst_105 = arith.constant dense<0.000000e+00> : vector<8x96xf32>
    %375 = tpu.matmul %370, %296, %cst_105 {dimension_numbers = #tpu.dot_dimension_numbers<[1], [0], [0], [1], [0, 0, 1, 1], [], []>} : vector<8x32xf32>, vector<32x96xf32>, vector<8x96xf32> -> vector<8x96xf32>
    %376 = vector.extract_strided_slice %374 {offsets = [0, 0], sizes = [8, 32], strides = [1, 1]} : vector<8x96xf32> to vector<8x32xf32>
    %377 = vector.extract_strided_slice %375 {offsets = [0, 0], sizes = [8, 32], strides = [1, 1]} : vector<8x96xf32> to vector<8x32xf32>
    %378 = arith.addf %376, %377 : vector<8x32xf32>
    %379 = arith.negf %378 : vector<8x32xf32>
    %380 = math.exp %379 : vector<8x32xf32>
    %cst_106 = arith.constant 1.000000e+00 : f32
    %381 = vector.broadcast %cst_106 : f32 to vector<8x32xf32>
    %382 = arith.addf %381, %380 : vector<8x32xf32>
    %383 = arith.divf %381, %382 : vector<8x32xf32>
    %384 = vector.extract_strided_slice %374 {offsets = [0, 32], sizes = [8, 32], strides = [1, 1]} : vector<8x96xf32> to vector<8x32xf32>
    %385 = vector.extract_strided_slice %375 {offsets = [0, 32], sizes = [8, 32], strides = [1, 1]} : vector<8x96xf32> to vector<8x32xf32>
    %386 = arith.addf %384, %385 : vector<8x32xf32>
    %387 = arith.negf %386 : vector<8x32xf32>
    %388 = math.exp %387 : vector<8x32xf32>
    %cst_107 = arith.constant 1.000000e+00 : f32
    %389 = vector.broadcast %cst_107 : f32 to vector<8x32xf32>
    %390 = arith.addf %389, %388 : vector<8x32xf32>
    %391 = arith.divf %389, %390 : vector<8x32xf32>
    %392 = vector.extract_strided_slice %374 {offsets = [0, 64], sizes = [8, 32], strides = [1, 1]} : vector<8x96xf32> to vector<8x32xf32>
    %393 = vector.extract_strided_slice %375 {offsets = [0, 64], sizes = [8, 32], strides = [1, 1]} : vector<8x96xf32> to vector<8x32xf32>
    %394 = vector.broadcast %298 : vector<1x32xf32> to vector<8x32xf32>
    %395 = arith.addf %393, %394 : vector<8x32xf32>
    %396 = arith.mulf %383, %395 : vector<8x32xf32>
    %397 = arith.addf %392, %396 : vector<8x32xf32>
    %398 = math.tanh %397 : vector<8x32xf32>
    %cst_108 = arith.constant 1.000000e+00 : f32
    %399 = vector.broadcast %cst_108 : f32 to vector<8x32xf32>
    %400 = arith.subf %399, %391 : vector<8x32xf32>
    %401 = arith.mulf %400, %398 : vector<8x32xf32>
    %402 = arith.mulf %391, %370 : vector<8x32xf32>
    %403 = arith.addf %401, %402 : vector<8x32xf32>
    %c3_i32_109 = arith.constant 3 : i32
    %c8_i32_110 = arith.constant 8 : i32
    %404 = arith.muli %c3_i32_109, %c8_i32_110 : i32
    %405 = tpu.assume_multiple %404, 8 : i32
    %406 = arith.index_cast %405 : i32 to index
    %c0_111 = arith.constant 0 : index
    %407 = vector.load %arg15[%406, %c0_111] : memref<64x96xf32, #tpu.memory_space<vmem>>, vector<8x96xf32>
    %cst_112 = arith.constant dense<0.000000e+00> : vector<8x96xf32>
    %408 = tpu.matmul %403, %296, %cst_112 {dimension_numbers = #tpu.dot_dimension_numbers<[1], [0], [0], [1], [0, 0, 1, 1], [], []>} : vector<8x32xf32>, vector<32x96xf32>, vector<8x96xf32> -> vector<8x96xf32>
    %409 = vector.extract_strided_slice %407 {offsets = [0, 0], sizes = [8, 32], strides = [1, 1]} : vector<8x96xf32> to vector<8x32xf32>
    %410 = vector.extract_strided_slice %408 {offsets = [0, 0], sizes = [8, 32], strides = [1, 1]} : vector<8x96xf32> to vector<8x32xf32>
    %411 = arith.addf %409, %410 : vector<8x32xf32>
    %412 = arith.negf %411 : vector<8x32xf32>
    %413 = math.exp %412 : vector<8x32xf32>
    %cst_113 = arith.constant 1.000000e+00 : f32
    %414 = vector.broadcast %cst_113 : f32 to vector<8x32xf32>
    %415 = arith.addf %414, %413 : vector<8x32xf32>
    %416 = arith.divf %414, %415 : vector<8x32xf32>
    %417 = vector.extract_strided_slice %407 {offsets = [0, 32], sizes = [8, 32], strides = [1, 1]} : vector<8x96xf32> to vector<8x32xf32>
    %418 = vector.extract_strided_slice %408 {offsets = [0, 32], sizes = [8, 32], strides = [1, 1]} : vector<8x96xf32> to vector<8x32xf32>
    %419 = arith.addf %417, %418 : vector<8x32xf32>
    %420 = arith.negf %419 : vector<8x32xf32>
    %421 = math.exp %420 : vector<8x32xf32>
    %cst_114 = arith.constant 1.000000e+00 : f32
    %422 = vector.broadcast %cst_114 : f32 to vector<8x32xf32>
    %423 = arith.addf %422, %421 : vector<8x32xf32>
    %424 = arith.divf %422, %423 : vector<8x32xf32>
    %425 = vector.extract_strided_slice %407 {offsets = [0, 64], sizes = [8, 32], strides = [1, 1]} : vector<8x96xf32> to vector<8x32xf32>
    %426 = vector.extract_strided_slice %408 {offsets = [0, 64], sizes = [8, 32], strides = [1, 1]} : vector<8x96xf32> to vector<8x32xf32>
    %427 = vector.broadcast %298 : vector<1x32xf32> to vector<8x32xf32>
    %428 = arith.addf %426, %427 : vector<8x32xf32>
    %429 = arith.mulf %416, %428 : vector<8x32xf32>
    %430 = arith.addf %425, %429 : vector<8x32xf32>
    %431 = math.tanh %430 : vector<8x32xf32>
    %cst_115 = arith.constant 1.000000e+00 : f32
    %432 = vector.broadcast %cst_115 : f32 to vector<8x32xf32>
    %433 = arith.subf %432, %424 : vector<8x32xf32>
    %434 = arith.mulf %433, %431 : vector<8x32xf32>
    %435 = arith.mulf %424, %403 : vector<8x32xf32>
    %436 = arith.addf %434, %435 : vector<8x32xf32>
    %c4_i32_116 = arith.constant 4 : i32
    %c8_i32_117 = arith.constant 8 : i32
    %437 = arith.muli %c4_i32_116, %c8_i32_117 : i32
    %438 = tpu.assume_multiple %437, 8 : i32
    %439 = arith.index_cast %438 : i32 to index
    %c0_118 = arith.constant 0 : index
    %440 = vector.load %arg15[%439, %c0_118] : memref<64x96xf32, #tpu.memory_space<vmem>>, vector<8x96xf32>
    %cst_119 = arith.constant dense<0.000000e+00> : vector<8x96xf32>
    %441 = tpu.matmul %436, %296, %cst_119 {dimension_numbers = #tpu.dot_dimension_numbers<[1], [0], [0], [1], [0, 0, 1, 1], [], []>} : vector<8x32xf32>, vector<32x96xf32>, vector<8x96xf32> -> vector<8x96xf32>
    %442 = vector.extract_strided_slice %440 {offsets = [0, 0], sizes = [8, 32], strides = [1, 1]} : vector<8x96xf32> to vector<8x32xf32>
    %443 = vector.extract_strided_slice %441 {offsets = [0, 0], sizes = [8, 32], strides = [1, 1]} : vector<8x96xf32> to vector<8x32xf32>
    %444 = arith.addf %442, %443 : vector<8x32xf32>
    %445 = arith.negf %444 : vector<8x32xf32>
    %446 = math.exp %445 : vector<8x32xf32>
    %cst_120 = arith.constant 1.000000e+00 : f32
    %447 = vector.broadcast %cst_120 : f32 to vector<8x32xf32>
    %448 = arith.addf %447, %446 : vector<8x32xf32>
    %449 = arith.divf %447, %448 : vector<8x32xf32>
    %450 = vector.extract_strided_slice %440 {offsets = [0, 32], sizes = [8, 32], strides = [1, 1]} : vector<8x96xf32> to vector<8x32xf32>
    %451 = vector.extract_strided_slice %441 {offsets = [0, 32], sizes = [8, 32], strides = [1, 1]} : vector<8x96xf32> to vector<8x32xf32>
    %452 = arith.addf %450, %451 : vector<8x32xf32>
    %453 = arith.negf %452 : vector<8x32xf32>
    %454 = math.exp %453 : vector<8x32xf32>
    %cst_121 = arith.constant 1.000000e+00 : f32
    %455 = vector.broadcast %cst_121 : f32 to vector<8x32xf32>
    %456 = arith.addf %455, %454 : vector<8x32xf32>
    %457 = arith.divf %455, %456 : vector<8x32xf32>
    %458 = vector.extract_strided_slice %440 {offsets = [0, 64], sizes = [8, 32], strides = [1, 1]} : vector<8x96xf32> to vector<8x32xf32>
    %459 = vector.extract_strided_slice %441 {offsets = [0, 64], sizes = [8, 32], strides = [1, 1]} : vector<8x96xf32> to vector<8x32xf32>
    %460 = vector.broadcast %298 : vector<1x32xf32> to vector<8x32xf32>
    %461 = arith.addf %459, %460 : vector<8x32xf32>
    %462 = arith.mulf %449, %461 : vector<8x32xf32>
    %463 = arith.addf %458, %462 : vector<8x32xf32>
    %464 = math.tanh %463 : vector<8x32xf32>
    %cst_122 = arith.constant 1.000000e+00 : f32
    %465 = vector.broadcast %cst_122 : f32 to vector<8x32xf32>
    %466 = arith.subf %465, %457 : vector<8x32xf32>
    %467 = arith.mulf %466, %464 : vector<8x32xf32>
    %468 = arith.mulf %457, %436 : vector<8x32xf32>
    %469 = arith.addf %467, %468 : vector<8x32xf32>
    %c5_i32_123 = arith.constant 5 : i32
    %c8_i32_124 = arith.constant 8 : i32
    %470 = arith.muli %c5_i32_123, %c8_i32_124 : i32
    %471 = tpu.assume_multiple %470, 8 : i32
    %472 = arith.index_cast %471 : i32 to index
    %c0_125 = arith.constant 0 : index
    %473 = vector.load %arg15[%472, %c0_125] : memref<64x96xf32, #tpu.memory_space<vmem>>, vector<8x96xf32>
    %cst_126 = arith.constant dense<0.000000e+00> : vector<8x96xf32>
    %474 = tpu.matmul %469, %296, %cst_126 {dimension_numbers = #tpu.dot_dimension_numbers<[1], [0], [0], [1], [0, 0, 1, 1], [], []>} : vector<8x32xf32>, vector<32x96xf32>, vector<8x96xf32> -> vector<8x96xf32>
    %475 = vector.extract_strided_slice %473 {offsets = [0, 0], sizes = [8, 32], strides = [1, 1]} : vector<8x96xf32> to vector<8x32xf32>
    %476 = vector.extract_strided_slice %474 {offsets = [0, 0], sizes = [8, 32], strides = [1, 1]} : vector<8x96xf32> to vector<8x32xf32>
    %477 = arith.addf %475, %476 : vector<8x32xf32>
    %478 = arith.negf %477 : vector<8x32xf32>
    %479 = math.exp %478 : vector<8x32xf32>
    %cst_127 = arith.constant 1.000000e+00 : f32
    %480 = vector.broadcast %cst_127 : f32 to vector<8x32xf32>
    %481 = arith.addf %480, %479 : vector<8x32xf32>
    %482 = arith.divf %480, %481 : vector<8x32xf32>
    %483 = vector.extract_strided_slice %473 {offsets = [0, 32], sizes = [8, 32], strides = [1, 1]} : vector<8x96xf32> to vector<8x32xf32>
    %484 = vector.extract_strided_slice %474 {offsets = [0, 32], sizes = [8, 32], strides = [1, 1]} : vector<8x96xf32> to vector<8x32xf32>
    %485 = arith.addf %483, %484 : vector<8x32xf32>
    %486 = arith.negf %485 : vector<8x32xf32>
    %487 = math.exp %486 : vector<8x32xf32>
    %cst_128 = arith.constant 1.000000e+00 : f32
    %488 = vector.broadcast %cst_128 : f32 to vector<8x32xf32>
    %489 = arith.addf %488, %487 : vector<8x32xf32>
    %490 = arith.divf %488, %489 : vector<8x32xf32>
    %491 = vector.extract_strided_slice %473 {offsets = [0, 64], sizes = [8, 32], strides = [1, 1]} : vector<8x96xf32> to vector<8x32xf32>
    %492 = vector.extract_strided_slice %474 {offsets = [0, 64], sizes = [8, 32], strides = [1, 1]} : vector<8x96xf32> to vector<8x32xf32>
    %493 = vector.broadcast %298 : vector<1x32xf32> to vector<8x32xf32>
    %494 = arith.addf %492, %493 : vector<8x32xf32>
    %495 = arith.mulf %482, %494 : vector<8x32xf32>
    %496 = arith.addf %491, %495 : vector<8x32xf32>
    %497 = math.tanh %496 : vector<8x32xf32>
    %cst_129 = arith.constant 1.000000e+00 : f32
    %498 = vector.broadcast %cst_129 : f32 to vector<8x32xf32>
    %499 = arith.subf %498, %490 : vector<8x32xf32>
    %500 = arith.mulf %499, %497 : vector<8x32xf32>
    %501 = arith.mulf %490, %469 : vector<8x32xf32>
    %502 = arith.addf %500, %501 : vector<8x32xf32>
    %c6_i32_130 = arith.constant 6 : i32
    %c8_i32_131 = arith.constant 8 : i32
    %503 = arith.muli %c6_i32_130, %c8_i32_131 : i32
    %504 = tpu.assume_multiple %503, 8 : i32
    %505 = arith.index_cast %504 : i32 to index
    %c0_132 = arith.constant 0 : index
    %506 = vector.load %arg15[%505, %c0_132] : memref<64x96xf32, #tpu.memory_space<vmem>>, vector<8x96xf32>
    %cst_133 = arith.constant dense<0.000000e+00> : vector<8x96xf32>
    %507 = tpu.matmul %502, %296, %cst_133 {dimension_numbers = #tpu.dot_dimension_numbers<[1], [0], [0], [1], [0, 0, 1, 1], [], []>} : vector<8x32xf32>, vector<32x96xf32>, vector<8x96xf32> -> vector<8x96xf32>
    %508 = vector.extract_strided_slice %506 {offsets = [0, 0], sizes = [8, 32], strides = [1, 1]} : vector<8x96xf32> to vector<8x32xf32>
    %509 = vector.extract_strided_slice %507 {offsets = [0, 0], sizes = [8, 32], strides = [1, 1]} : vector<8x96xf32> to vector<8x32xf32>
    %510 = arith.addf %508, %509 : vector<8x32xf32>
    %511 = arith.negf %510 : vector<8x32xf32>
    %512 = math.exp %511 : vector<8x32xf32>
    %cst_134 = arith.constant 1.000000e+00 : f32
    %513 = vector.broadcast %cst_134 : f32 to vector<8x32xf32>
    %514 = arith.addf %513, %512 : vector<8x32xf32>
    %515 = arith.divf %513, %514 : vector<8x32xf32>
    %516 = vector.extract_strided_slice %506 {offsets = [0, 32], sizes = [8, 32], strides = [1, 1]} : vector<8x96xf32> to vector<8x32xf32>
    %517 = vector.extract_strided_slice %507 {offsets = [0, 32], sizes = [8, 32], strides = [1, 1]} : vector<8x96xf32> to vector<8x32xf32>
    %518 = arith.addf %516, %517 : vector<8x32xf32>
    %519 = arith.negf %518 : vector<8x32xf32>
    %520 = math.exp %519 : vector<8x32xf32>
    %cst_135 = arith.constant 1.000000e+00 : f32
    %521 = vector.broadcast %cst_135 : f32 to vector<8x32xf32>
    %522 = arith.addf %521, %520 : vector<8x32xf32>
    %523 = arith.divf %521, %522 : vector<8x32xf32>
    %524 = vector.extract_strided_slice %506 {offsets = [0, 64], sizes = [8, 32], strides = [1, 1]} : vector<8x96xf32> to vector<8x32xf32>
    %525 = vector.extract_strided_slice %507 {offsets = [0, 64], sizes = [8, 32], strides = [1, 1]} : vector<8x96xf32> to vector<8x32xf32>
    %526 = vector.broadcast %298 : vector<1x32xf32> to vector<8x32xf32>
    %527 = arith.addf %525, %526 : vector<8x32xf32>
    %528 = arith.mulf %515, %527 : vector<8x32xf32>
    %529 = arith.addf %524, %528 : vector<8x32xf32>
    %530 = math.tanh %529 : vector<8x32xf32>
    %cst_136 = arith.constant 1.000000e+00 : f32
    %531 = vector.broadcast %cst_136 : f32 to vector<8x32xf32>
    %532 = arith.subf %531, %523 : vector<8x32xf32>
    %533 = arith.mulf %532, %530 : vector<8x32xf32>
    %534 = arith.mulf %523, %502 : vector<8x32xf32>
    %535 = arith.addf %533, %534 : vector<8x32xf32>
    %c7_i32_137 = arith.constant 7 : i32
    %c8_i32_138 = arith.constant 8 : i32
    %536 = arith.muli %c7_i32_137, %c8_i32_138 : i32
    %537 = tpu.assume_multiple %536, 8 : i32
    %538 = arith.index_cast %537 : i32 to index
    %c0_139 = arith.constant 0 : index
    %539 = vector.load %arg15[%538, %c0_139] : memref<64x96xf32, #tpu.memory_space<vmem>>, vector<8x96xf32>
    %cst_140 = arith.constant dense<0.000000e+00> : vector<8x96xf32>
    %540 = tpu.matmul %535, %296, %cst_140 {dimension_numbers = #tpu.dot_dimension_numbers<[1], [0], [0], [1], [0, 0, 1, 1], [], []>} : vector<8x32xf32>, vector<32x96xf32>, vector<8x96xf32> -> vector<8x96xf32>
    %541 = vector.extract_strided_slice %539 {offsets = [0, 0], sizes = [8, 32], strides = [1, 1]} : vector<8x96xf32> to vector<8x32xf32>
    %542 = vector.extract_strided_slice %540 {offsets = [0, 0], sizes = [8, 32], strides = [1, 1]} : vector<8x96xf32> to vector<8x32xf32>
    %543 = arith.addf %541, %542 : vector<8x32xf32>
    %544 = arith.negf %543 : vector<8x32xf32>
    %545 = math.exp %544 : vector<8x32xf32>
    %cst_141 = arith.constant 1.000000e+00 : f32
    %546 = vector.broadcast %cst_141 : f32 to vector<8x32xf32>
    %547 = arith.addf %546, %545 : vector<8x32xf32>
    %548 = arith.divf %546, %547 : vector<8x32xf32>
    %549 = vector.extract_strided_slice %539 {offsets = [0, 32], sizes = [8, 32], strides = [1, 1]} : vector<8x96xf32> to vector<8x32xf32>
    %550 = vector.extract_strided_slice %540 {offsets = [0, 32], sizes = [8, 32], strides = [1, 1]} : vector<8x96xf32> to vector<8x32xf32>
    %551 = arith.addf %549, %550 : vector<8x32xf32>
    %552 = arith.negf %551 : vector<8x32xf32>
    %553 = math.exp %552 : vector<8x32xf32>
    %cst_142 = arith.constant 1.000000e+00 : f32
    %554 = vector.broadcast %cst_142 : f32 to vector<8x32xf32>
    %555 = arith.addf %554, %553 : vector<8x32xf32>
    %556 = arith.divf %554, %555 : vector<8x32xf32>
    %557 = vector.extract_strided_slice %539 {offsets = [0, 64], sizes = [8, 32], strides = [1, 1]} : vector<8x96xf32> to vector<8x32xf32>
    %558 = vector.extract_strided_slice %540 {offsets = [0, 64], sizes = [8, 32], strides = [1, 1]} : vector<8x96xf32> to vector<8x32xf32>
    %559 = vector.broadcast %298 : vector<1x32xf32> to vector<8x32xf32>
    %560 = arith.addf %558, %559 : vector<8x32xf32>
    %561 = arith.mulf %548, %560 : vector<8x32xf32>
    %562 = arith.addf %557, %561 : vector<8x32xf32>
    %563 = math.tanh %562 : vector<8x32xf32>
    %cst_143 = arith.constant 1.000000e+00 : f32
    %564 = vector.broadcast %cst_143 : f32 to vector<8x32xf32>
    %565 = arith.subf %564, %556 : vector<8x32xf32>
    %566 = arith.mulf %565, %563 : vector<8x32xf32>
    %567 = arith.mulf %556, %535 : vector<8x32xf32>
    %568 = arith.addf %566, %567 : vector<8x32xf32>
    %c8_i32_144 = arith.constant 8 : i32
    %c1_145 = arith.constant 1 : index
    %c0_146 = arith.constant 0 : index
    %c0_147 = arith.constant 0 : index
    %569 = vector.load %arg14[%c1_145, %c0_146, %c0_147] : memref<2x8x32xf32, #tpu.memory_space<vmem>>, vector<1x8x32xf32>
    %570 = vector.shape_cast %569 : vector<1x8x32xf32> to vector<8x32xf32>
    %571 = vector.shape_cast %568 : vector<8x32xf32> to vector<1x8x32xf32>
    tpu.vector_store %arg14[%c1_145, %c0_146, %c0_147], %571 {strides = array<i32>} : memref<2x8x32xf32, #tpu.memory_space<vmem>>, vector<1x8x32xf32>,
    %c0_148 = arith.constant 0 : index
    %c0_149 = arith.constant 0 : index
    %572 = vector.load %arg11[%c0_148, %c0_149] : memref<32x128xf32, #tpu.memory_space<vmem>>, vector<32x128xf32>
    %cst_150 = arith.constant dense<0.000000e+00> : vector<8x128xf32>
    %573 = tpu.matmul %568, %572, %cst_150 {dimension_numbers = #tpu.dot_dimension_numbers<[1], [0], [0], [1], [0, 0, 1, 1], [], []>} : vector<8x32xf32>, vector<32x128xf32>, vector<8x128xf32> -> vector<8x128xf32>
    %c0_151 = arith.constant 0 : index
    %c0_152 = arith.constant 0 : index
    %574 = vector.load %arg12[%c0_151, %c0_152] : memref<1x128xf32, #tpu.memory_space<vmem>>, vector<1x128xf32>
    %575 = vector.broadcast %574 : vector<1x128xf32> to vector<8x128xf32>
    %576 = arith.addf %573, %575 : vector<8x128xf32>
    %c0_153 = arith.constant 0 : index
    %c0_154 = arith.constant 0 : index
    %577 = vector.load %arg13[%c0_153, %c0_154] : memref<8x128xf32, #tpu.memory_space<vmem>>, vector<8x128xf32>
    tpu.vector_store %arg13[%c0_153, %c0_154], %576 {strides = array<i32>} : memref<8x128xf32, #tpu.memory_space<vmem>>, vector<8x128xf32>,
    return
  }
  func.func @transform_0(%arg0: i32) -> (i32, i32) {
    %c0_i32 = arith.constant 0 : i32
    %c0_i32_0 = arith.constant 0 : i32
    %c0_i32_1 = arith.constant 0 : i32
    return %c0_i32, %c0_i32_0 : i32, i32
  }
  func.func @transform_1(%arg0: i32) -> (i32, i32, i32) {
    %c0_i32 = arith.constant 0 : i32
    %c0_i32_0 = arith.constant 0 : i32
    %c0_i32_1 = arith.constant 0 : i32
    %c0_i32_2 = arith.constant 0 : i32
    return %c0_i32, %c0_i32_0, %c0_i32_1 : i32, i32, i32
  }
  func.func @transform_2(%arg0: i32) -> (i32, i32) {
    %c0_i32 = arith.constant 0 : i32
    %c0_i32_0 = arith.constant 0 : i32
    %c0_i32_1 = arith.constant 0 : i32
    return %c0_i32, %c0_i32_0 : i32, i32
  }
  func.func @transform_3(%arg0: i32) -> (i32, i32) {
    %c0_i32 = arith.constant 0 : i32
    %c0_i32_0 = arith.constant 0 : i32
    %c0_i32_1 = arith.constant 0 : i32
    return %c0_i32, %c0_i32_0 : i32, i32
  }
  func.func @transform_4(%arg0: i32) -> (i32, i32) {
    %c0_i32 = arith.constant 0 : i32
    %c0_i32_0 = arith.constant 0 : i32
    %c0_i32_1 = arith.constant 0 : i32
    return %c0_i32, %c0_i32_0 : i32, i32
  }
  func.func @transform_5(%arg0: i32) -> (i32, i32) {
    %c0_i32 = arith.constant 0 : i32
    %c0_i32_0 = arith.constant 0 : i32
    %c0_i32_1 = arith.constant 0 : i32
    return %c0_i32, %c0_i32_0 : i32, i32
  }
  func.func @transform_6(%arg0: i32) -> (i32, i32) {
    %c0_i32 = arith.constant 0 : i32
    %c0_i32_0 = arith.constant 0 : i32
    %c0_i32_1 = arith.constant 0 : i32
    return %c0_i32, %c0_i32_0 : i32, i32
  }
  func.func @transform_7(%arg0: i32) -> (i32, i32) {
    %c0_i32 = arith.constant 0 : i32
    %c0_i32_0 = arith.constant 0 : i32
    %c0_i32_1 = arith.constant 0 : i32
    return %c0_i32, %c0_i32_0 : i32, i32
  }
  func.func @transform_8(%arg0: i32) -> (i32, i32) {
    %c0_i32 = arith.constant 0 : i32
    %c0_i32_0 = arith.constant 0 : i32
    %c0_i32_1 = arith.constant 0 : i32
    return %c0_i32, %c0_i32_0 : i32, i32
  }
  func.func @transform_9(%arg0: i32) -> (i32, i32) {
    %c0_i32 = arith.constant 0 : i32
    %c0_i32_0 = arith.constant 0 : i32
    %c0_i32_1 = arith.constant 0 : i32
    return %c0_i32, %c0_i32_0 : i32, i32
  }
  func.func @transform_10(%arg0: i32) -> (i32, i32) {
    %c0_i32 = arith.constant 0 : i32
    %c0_i32_0 = arith.constant 0 : i32
    %c0_i32_1 = arith.constant 0 : i32
    return %c0_i32, %c0_i32_0 : i32, i32
  }
  func.func @transform_11(%arg0: i32) -> (i32, i32) {
    %c0_i32 = arith.constant 0 : i32
    %c0_i32_0 = arith.constant 0 : i32
    %c0_i32_1 = arith.constant 0 : i32
    return %c0_i32, %c0_i32_0 : i32, i32
  }
  func.func @transform_12(%arg0: i32) -> (i32, i32) {
    %c0_i32 = arith.constant 0 : i32
    %c0_i32_0 = arith.constant 0 : i32
    %c0_i32_1 = arith.constant 0 : i32
    return %c0_i32, %c0_i32_0 : i32, i32
  }
  func.func @transform_13(%arg0: i32) -> (i32, i32, i32) {
    %c0_i32 = arith.constant 0 : i32
    %c0_i32_0 = arith.constant 0 : i32
    %c0_i32_1 = arith.constant 0 : i32
    %c0_i32_2 = arith.constant 0 : i32
    return %c0_i32, %c0_i32_0, %c0_i32_1 : i32, i32, i32
  }
}

</mosaic_0001>

<bundles_post_ra>
// kernel: tpu_custom_call.1
= control target key start
LH: loop header
LB: loop body
LE: loop exit
PB: predicated region body
PF: predicated region fallthrough
CT: control target
= control target key end

     0   :  { %19 = vsyncpa [#allocation5], 0  ;;  %s3542_s0 = inlined_call_operand.vmem [shape: f32[64,32], index: 0, kind: input, shape index: {}]   ;;  %s3543_s1 = inlined_call_operand.hbm [shape: f32[2,8,32], index: 1, kind: input, shape index: {}]   ;;  %s3544_s2 = inlined_call_operand.vmem [shape: f32[32,96], index: 2, kind: input, shape index: {}]   ;;  %s3545_s3 = inlined_call_operand.vmem [shape: f32[32,96], index: 3, kind: input, shape index: {}]   ;;  %s3546_s4 = inlined_call_operand.vmem [shape: f32[1,96], index: 4, kind: input, shape index: {}]   ;;  %s3547_s5 = inlined_call_operand.vmem [shape: f32[1,32], index: 5, kind: input, shape index: {}]   ;;  %s3548_s6 = inlined_call_operand.vmem [shape: f32[32,96], index: 6, kind: input, shape index: {}]   ;;  %s3549_s7 = inlined_call_operand.hbm [shape: f32[32,96], index: 7, kind: input, shape index: {}]   ;;  %s3550_s8 = inlined_call_operand.hbm [shape: f32[1,96], index: 8, kind: input, shape index: {}]   ;;  %s3551_s9 = inlined_call_operand.hbm [shape: f32[1,32], index: 9, kind: input, shape index: {}]   ;;  %s3552_s10 = inlined_call_operand.vmem [shape: f32[32,128], index: 10, kind: input, shape index: {}]   ;;  %s3553_s11 = inlined_call_operand.vmem [shape: f32[1,128], index: 11, kind: input, shape index: {}]   ;;  %s3554_s12 = inlined_call_operand.hbm [shape: f32[8,128], index: 12, kind: output, shape index: {0}]   ;;  %s3555_s13 = inlined_call_operand.hbm [shape: f32[2,8,32], index: 13, kind: output, shape index: {1}]  }
   0x1   :  { %20 = vsyncpa [#allocation8], 0 }
   0x2   :  { %21 = vsyncpa [#allocation11], 0 }
   0x3   :  { %22 = vsyncpa [#allocation6], 0 }
   0x4   :  { %23 = vsyncpa [#allocation14], 0  ;;  %s3006_s25 = smov [#allocation7]   ;;  %s3007_s27 = smov [#allocation4]  }
   0x5   :  { %s53_s26 = sshll.u32 %s3006_s25, 4  ;;  %s31_s28 = sshll.u32 %s3007_s27, 4  ;;  %s54_s26 = int_to_ptr.vmem [resolvable:$true] %s53_s26  ;;  %s3090_s28 = int_to_ptr.vmem [resolvable:$true] %s31_s28 }
   0x6   :  { %s2864_s14 = scalar_lea.hbm %s3549_s7, 512 }
   0x7   :  { %p2865_p0 = scmp.ne.s32.totalorder %s3549_s7, %s2864_s14  ;;  %p2868_p1 = scmp.lt.u32.totalorder %s2864_s14, %s3549_s7 }
   0x9   :  { %p2870_p2 = pnand %p2868_p1, %p2865_p0 }
   0xb   :  { %2873 = shalt.err (!%p2870_p2)
}
   0xc   :  { %s2874_s19 = scalar_lea.vmem %s54_s26, 512  ;;  %p2879_p4 = scmp.lt.s32.totalorder %s54_s26, %s54_s26 }
   0xd   :  { %p2875_p3 = scmp.ne.s32.totalorder %s54_s26, %s2874_s19  ;;  %p2880_p5 = scmp.lt.s32.totalorder %s2874_s19, %s2874_s19 }
   0xf   :  { %p2881_p6 = por %p2880_p5, %p2879_p4 }
  0x11   :  { %p2882_p7 = pnand %p2881_p6, %p2875_p3 }
  0x13   :  { %2885 = shalt.err (!%p2882_p7)
}
  0x14   :  { %s3008_s20 = smov 128   ;;  %s3009_s21 = smov 8  }
  0x15   :  { %59 = dma.hbm_to_vmem [thread:$0]  %s3549_s7, 512, %s54_s26, [#allocation8], %s3008_s20, %s3008_s20, %s3009_s21  }
  0x16   :  { %s2886_s27 = scalar_lea.hbm %s3543_s1, 256 }
  0x17   :  { %p2887_p8 = scmp.ne.s32.totalorder %s3543_s1, %s2886_s27  ;;  %p2890_p9 = scmp.lt.u32.totalorder %s2886_s27, %s3543_s1 }
  0x19   :  { %p2892_p10 = pnand %p2890_p9, %p2887_p8 }
  0x1b   :  { %2895 = shalt.err (!%p2892_p10)
}
  0x1c   :  { %s2896_s16 = scalar_lea.vmem %s3090_s28, 256  ;;  %p2901_p12 = scmp.lt.s32.totalorder %s3090_s28, %s3090_s28 }
  0x1d   :  { %p2897_p11 = scmp.ne.s32.totalorder %s3090_s28, %s2896_s16  ;;  %p2902_p13 = scmp.lt.s32.totalorder %s2896_s16, %s2896_s16 }
  0x1f   :  { %p2903_p0 = por %p2902_p13, %p2901_p12 }
  0x21   :  { %p2904_p1 = pnand %p2903_p0, %p2897_p11 }
  0x23   :  { %2907 = shalt.err (!%p2904_p1)
}
  0x24   :  { %37 = dma.hbm_to_vmem [thread:$0]  %s3543_s1, 256, %s3090_s28, [#allocation5], %s3008_s20, %s3008_s20, %s3009_s21  }
  0x25   :  { %s3010_s17 = smov [#allocation9]   ;;  %s3011_s19 = smov [#allocation10]  }
  0x26   :  { %s66_s18 = sshll.u32 %s3010_s17, 4  ;;  %s76_s22 = sshll.u32 %s3011_s19, 4  ;;  %s67_s18 = int_to_ptr.vmem [resolvable:$true] %s66_s18  ;;  %s77_s22 = int_to_ptr.vmem [resolvable:$true] %s76_s22 }
  0x27   :  { %s2908_s25 = scalar_lea.hbm %s3550_s8, 16 }
  0x28   :  { %p2909_p2 = scmp.ne.s32.totalorder %s3550_s8, %s2908_s25  ;;  %p2912_p3 = scmp.lt.u32.totalorder %s2908_s25, %s3550_s8 }
  0x2a   :  { %p2914_p4 = pnand %p2912_p3, %p2909_p2 }
  0x2c   :  { %2917 = shalt.err (!%p2914_p4)
}
  0x2d   :  { %s2918_s1 = scalar_lea.vmem %s67_s18, 16  ;;  %s2922_s28 = scalar_lea.vmem %s67_s18, 32 }
  0x2e   :  { %p2919_p5 = scmp.ne.s32.totalorder %s67_s18, %s2918_s1  ;;  %p2923_p6 = scmp.lt.s32.totalorder %s67_s18, %s67_s18 }
  0x2f   :  { %p2924_p7 = scmp.lt.s32.totalorder %s2922_s28, %s2918_s1 }
  0x31   :  { %p2925_p8 = por %p2924_p7, %p2923_p6 }
  0x33   :  { %p2926_p9 = pnand %p2925_p8, %p2919_p5 }
  0x35   :  { %2929 = shalt.err (!%p2926_p9)
}
  0x36   :  { %69 = dma.hbm_to_vmem [thread:$0]  %s3550_s8, 16, %s67_s18, [#allocation8]  }
  0x37   :  { %s2930_s17 = scalar_lea.hbm %s3551_s9, 16 }
  0x38   :  { %p2931_p10 = scmp.ne.s32.totalorder %s3551_s9, %s2930_s17  ;;  %p2934_p11 = scmp.lt.u32.totalorder %s2930_s17, %s3551_s9 }
  0x3a   :  { %p2936_p12 = pnand %p2934_p11, %p2931_p10 }
  0x3c   :  { %2939 = shalt.err (!%p2936_p12)
}
  0x3d   :  { %s2940_s27 = scalar_lea.vmem %s77_s22, 16  ;;  %s2944_s29 = scalar_lea.vmem %s77_s22, 32 }
  0x3e   :  { %p2941_p13 = scmp.ne.s32.totalorder %s77_s22, %s2940_s27  ;;  %p2945_p0 = scmp.lt.s32.totalorder %s77_s22, %s77_s22 }
  0x3f   :  { %p2946_p1 = scmp.lt.s32.totalorder %s2944_s29, %s2940_s27 }
  0x41   :  { %p2947_p2 = por %p2946_p1, %p2945_p0 }
  0x43   :  { %p2948_p3 = pnand %p2947_p2, %p2941_p13 }
  0x45   :  { %2951 = shalt.err (!%p2948_p3)
}
  0x46   :  { %79 = dma.hbm_to_vmem [thread:$0]  %s3551_s9, 16, %s77_s22, [#allocation11]  }
  0x47   :  { %2996 = dma.done.wait [#allocation5], 256  }
  0x48   :  { %2997 = vsyncadd [#allocation5], 4294967040 }
  0x49   :  { %2998 = dma.done.wait [#allocation8], 528  }
  0x4a   :  { %2999 = vsyncadd [#allocation8], 4294966768 }
  0x4b   :  { %3000 = dma.done.wait [#allocation11], 16  }
  0x4c   :  { %3001 = vsyncadd [#allocation11], 4294967280  ;;  %v3012_v0 = vmov 0.0|0.0   ;;  %vm3013_vm0 = vmmov 0   ;;  %v3014_v1 = vmov 0.0   ;;  %v104_v2 = vld [vmem:[%s3544_s2] sm:$0xff] }
  0x4d   :  { %2644 = vmatprep.subr.bf16.mxu1 %v3012_v0  ;;  %2437 = vmatprep.mubr.msk.f32.mxu1 %vm3013_vm0, %v3014_v1  ;;  %v105_v3 = vld [vmem:[%s3544_s2 + $0x8] sm:$0xff]  ;;  %v108_v4 = vld [vmem:[%s3545_s3] sm:$0xff]  ;;  %vm120_vm1 = vcmask 261120   ;;  %v106_v7 = vld [vmem:[%s3544_s2 + $0x10] sm:$0xff]  ;;  %vm250_vm2 = vcmask 785408   ;;  %s3016_s9 = smov 32  }
  0x4e   :  { %v2636_v5 = vpack.c.bf16 %v105_v3, %v104_v2  ;;  %v109_v6 = vld [vmem:[%s3545_s3 + $0x8] sm:$0xff]  ;;  %v107_v8 = vld [vmem:[%s3544_s2 + $0x18] sm:$0xff]  ;;  %v110_v11 = vld [vmem:[%s3545_s3 + $0x10] sm:$0xff] }
  0x4f   :  { %v3172_v9 = vpack.c.bf16 %v109_v6, %v108_v4  ;;  %v2640_v10 = vpack.c.bf16 %v107_v8, %v106_v7  ;;  %v111_v12 = vld [vmem:[%s3545_s3 + $0x18] sm:$0xff]  ;;  %v96_v13 = vld [vmem:[%s3542_s0] sm:$0xff]  ;;  %s3015_s3 = smov 64   ;;  %v97_v17 = vld [vmem:[%s3542_s0 + $0x8] sm:$0xff] }
  0x50   :  { %2637 = vmatprep.subr.bf16.mxu0 %v2636_v5  ;;  %2417 = vmatprep.mubr.msk.f32.mxu0 %vm120_vm1, %v96_v13  ;;  %v2257_v14 = vld [vmem:[%s3547_s5] ss:$0 sm:$0xff]  ;;  %v3188_v15 = vpack.c.bf16 %v111_v12, %v110_v11  ;;  %v98_v58 = vld [vmem:[%s3542_s0 + $0x10] sm:$0xff]  ;;  %v99_v59 = vld [vmem:[%s3542_s0 + $0x18] sm:$0xff] }
  0x51   :  { %2646 = vmatpush3.bf16.msra.mxu1 %v3172_v9  ;;  %2639 = vmatpush3.bf16.msra.mxu0 %v2636_v5  ;;  %v259_v16 = vld [vmem:[#allocation4] sm:$0xff]  ;;  %v101_v61 = vld [vmem:[%s3542_s0 + $0x28] sm:$0xff]  ;;  %v102_v62 = vld [vmem:[%s3542_s0 + $0x30] sm:$0xff] }
  0x52   :  { %2647 = vmatprep.subr.bf16.mxu1 %v3012_v0  ;;  %2641 = vmatprep.subr.bf16.mxu0 %v2640_v10  ;;  %v3215_v19 = vld [vmem:[%s3546_s4] ss:$0 sm:$0xff]  ;;  %s3017_s4 = smov 96   ;;  %v103_v63 = vld [vmem:[%s3542_s0 + $0x38] sm:$0xff] }
  0x53   :  { %346 = vrot.lane.b32.xlu0 %v2257_v14, %s3015_s3  ;;  %v100_v60 = vld [vmem:[%s3542_s0 + $0x20] sm:$0xff] }
  0x55   :  { %2649 = vmatpush3.bf16.msra.mxu1 %v3188_v15  ;;  %2643 = vmatpush3.bf16.msra.mxu0 %v2640_v10 }
  0x56   :  { %2650 = vmatprep.subr.bf16.mxu1 %v3012_v0  ;;  %2656 = vmatprep.subr.bf16.mxu0 %v3012_v0 }
  0x58   :  { %2438 = vmatmul.mubr.msk.f32.vlgmr.msra.gmra.mrb[0].mxu1 %vm120_vm1, %v259_v16  ;;  %2418 = vmatmul.mubr.msk.f32.vlgmr.msra.gmra.mrb[0].mxu0 %vm120_vm1, %v97_v17 }
  0x59   :  { %2652 = vmatpush3.bf16.msra.mxu1 %v3172_v9  ;;  %2448 = vmatprep.mubr.msk.f32.mxu1 %vm3013_vm0, %v3014_v1 }
  0x5a   :  { %2653 = vmatprep.subr.bf16.mxu1 %v3012_v0  ;;  %2658 = vmatpush3.bf16.msra.mxu0 %v3172_v9 }
  0x5b   :  { %2659 = vmatprep.subr.bf16.mxu0 %v3012_v0  ;;  %2420 = vmatprep.mubr.msk.f32.mxu0 %vm120_vm1, %v98_v58 }
  0x5c   :  { %2421 = vmatmul.mubr.msk.f32.gmra.mrb[2].mxu0 %vm120_vm1, %v99_v59 }
  0x5d   :  { %2655 = vmatpush3.bf16.msra.mxu1 %v3188_v15  ;;  %2423 = vmatprep.mubr.msk.f32.mxu0 %vm120_vm1, %v100_v60 }
  0x5e   :  { %2661 = vmatpush3.bf16.msra.mxu0 %v3188_v15  ;;  %2662 = vmatprep.subr.bf16.mxu1 %v3012_v0 }
  0x5f   :  { %2668 = vmatprep.subr.bf16.mxu0 %v3012_v0 }
  0x60   :  { %2424 = vmatmul.mubr.msk.f32.gmra.mrb[4].mxu0 %vm120_vm1, %v101_v61 }
  0x61   :  { %2426 = vmatprep.mubr.msk.f32.mxu0 %vm120_vm1, %v102_v62 }
  0x64   :  { %2427 = vmatmul.mubr.msk.f32.gmra.mrb[6].mxu0 %vm120_vm1, %v103_v63 }
  0x65   :  { %2459 = vmatprep.mubr.msk.f32.mxu0 %vm3013_vm0, %v3014_v1 }
  0xc5   :  { %v3210_v18 = vpop.permute.xlu0 %346 }
 0x12b   :  { %v330_v20 = vpop.f32.mrb[0].mxu1  ;;  %v2419_v21 = vpop.f32.mrb[0].mxu0 }
 0x12c   :  { %v349_v22 = vadd.f32 %v3210_v18, %v330_v20  ;;  %v217_v23 = vadd.f32 %v2419_v21, %v3215_v19  ;;  %v2439_v24 = vpop.f32.mrb[1].mxu1  ;;  %v211_v25 = vpop.f32.mrb[1].mxu0 }
 0x12d   :  { %v212_v26 = vadd.f32 %v3215_v19, %v211_v25 }
 0x12e   :  { %252 = vst.msk [vmem:[#allocation2 + $0x8] sm:$0xff] %vm250_vm2, %v217_v23  ;;  %351 = vrot.lane.b32.xlu0 %v349_v22, %s3015_s3 }
 0x12f   :  { %251 = vst.msk [vmem:[#allocation2] sm:$0xff] %vm250_vm2, %v212_v26  ;;  %v2422_v8 = vpop.f32.mrb[2].mxu0 }
 0x130   :  { %v227_v10 = vadd.f32 %v2422_v8, %v3215_v19  ;;  %v221_v11 = vpop.f32.mrb[3].mxu0 }
 0x131   :  { %v222_v12 = vadd.f32 %v3215_v19, %v221_v11 }
 0x132   :  { %367 = vrot.lane.b32.xlu0 %v259_v16, %s3016_s9  ;;  %254 = vst.msk [vmem:[#allocation2 + $0x18] sm:$0xff] %vm250_vm2, %v227_v10 }
 0x133   :  { %253 = vst.msk [vmem:[#allocation2 + $0x10] sm:$0xff] %vm250_vm2, %v222_v12  ;;  %v2425_v13 = vpop.f32.mrb[4].mxu0 }
 0x134   :  { %v237_v14 = vadd.f32 %v2425_v13, %v3215_v19  ;;  %v231_v16 = vpop.f32.mrb[5].mxu0 }
 0x135   :  { %v378_v48 = vld [vmem:[#allocation2 + $0x8] sm:$0xff]  ;;  %v232_v17 = vadd.f32 %v3215_v19, %v231_v16 }
 0x136   :  { %v260_v27 = vld [vmem:[#allocation2] sm:$0xff]  ;;  %256 = vst.msk [vmem:[#allocation2 + $0x28] sm:$0xff] %vm250_vm2, %v237_v14 }
 0x137   :  { %v334_v28 = vadd.f32 %v330_v20, %v260_v27  ;;  %255 = vst.msk [vmem:[#allocation2 + $0x20] sm:$0xff] %vm250_vm2, %v232_v17  ;;  %v2428_v20 = vpop.f32.mrb[6].mxu0 }
 0x138   :  { %v247_v21 = vadd.f32 %v2428_v20, %v3215_v19  ;;  %v241_v22 = vpop.f32.mrb[7].mxu0 }
 0x139   :  { %v2256_v29 = vmul.f32 -1.442695, %v334_v28  ;;  %v242_v23 = vadd.f32 %v3215_v19, %v241_v22 }
 0x13a   :  { %258 = vst.msk [vmem:[#allocation2 + $0x38] sm:$0xff] %vm250_vm2, %v247_v21 }
 0x13b   :  { %2768 = vpow2.f32 %v2256_v29  ;;  %257 = vst.msk [vmem:[#allocation2 + $0x30] sm:$0xff] %vm250_vm2, %v242_v23 }
 0x145   :  { %v2769_v30 = vpop.eup %2768 }
 0x146   :  { %v338_v31 = vadd.f32 1.0, %v2769_v30 }
 0x148   :  { %2770 = vrcp.f32 %v338_v31 }
 0x152   :  { %v2771_v32 = vpop.eup %2770 }
 0x153   :  { %v361_v39 = vsub.f32 1.0, %v2771_v32 }
 0x1a0   :  { %v352_v33 = vpop.permute.xlu0 %351 }
 0x1a1   :  { %v354_v34 = vmul.f32 %v2771_v32, %v352_v33 }
 0x1a3   :  { %356 = vrot.lane.b32.xlu1 %v354_v34, %s3015_s3 }
 0x1a4   :  { %v368_v38 = vpop.permute.xlu0 %367 }
 0x1a5   :  { %v370_v41 = vmul.f32 %v2771_v32, %v368_v38 }
 0x215   :  { %v357_v35 = vpop.permute.xlu1 %356 }
 0x216   :  { %v359_v36 = vadd.f32 %v357_v35, %v260_v27  ;;  %v485_v27 = vld [vmem:[#allocation2 + $0x10] sm:$0xff] }
 0x218   :  { %2772 = vtanh.f32 %v359_v36 }
 0x222   :  { %v2773_v37 = vpop.eup %2772 }
 0x223   :  { %363 = vrot.lane.b32.xlu1 %v2773_v37, %s3017_s4 }
 0x295   :  { %v364_v40 = vpop.permute.xlu1 %363 }
 0x296   :  { %v366_v42 = vmul.f32 %v364_v40, %v361_v39 }
 0x298   :  { %v371_v43 = vadd.f32 %v370_v41, %v366_v42 }
 0x29a   :  { %373 = vrot.lane.b32.xlu1 %v371_v43, %s3017_s4 }
 0x30c   :  { %v374_v44 = vpop.permute.xlu1 %373 }
 0x30d   :  { %376 = vst.msk [vmem:[#allocation3] sm:$0xff] %vm120_vm1, %v374_v44  ;;  %2449 = vmatmul.mubr.msk.f32.vlgmr.msra.gmra.mrb[2].mxu1 %vm120_vm1, %v374_v44 }
 0x30e   :  { %2664 = vmatpush3.bf16.msra.mxu1 %v3172_v9  ;;  %2470 = vmatprep.mubr.msk.f32.mxu1 %vm3013_vm0, %v3014_v1 }
 0x30f   :  { %2665 = vmatprep.subr.bf16.mxu1 %v3012_v0 }
 0x312   :  { %2667 = vmatpush3.bf16.msra.mxu1 %v3188_v15 }
 0x313   :  { %2674 = vmatprep.subr.bf16.mxu1 %v3012_v0 }
 0x3e0   :  { %v447_v45 = vpop.f32.mrb[2].mxu1 }
 0x3e1   :  { %v458_v46 = vadd.f32 %v447_v45, %v3210_v18  ;;  %v2450_v47 = vpop.f32.mrb[3].mxu1  ;;  %v451_v49 = vadd.f32 %v447_v45, %v378_v48 }
 0x3e2   :  { %v592_v47 = vld [vmem:[#allocation2 + $0x18] sm:$0xff] }
 0x3e3   :  { %460 = vrot.lane.b32.xlu0 %v458_v46, %s3015_s3  ;;  %v2259_v50 = vmul.f32 -1.442695, %v451_v49 }
 0x3e5   :  { %2774 = vpow2.f32 %v2259_v50 }
 0x3ef   :  { %v2775_v51 = vpop.eup %2774 }
 0x3f0   :  { %v455_v52 = vadd.f32 1.0, %v2775_v51 }
 0x3f2   :  { %2776 = vrcp.f32 %v455_v52 }
 0x3fc   :  { %v2777_v53 = vpop.eup %2776 }
 0x3fd   :  { %v470_v3 = vsub.f32 1.0, %v2777_v53  ;;  %v476_v5 = vmul.f32 %v2777_v53, %v371_v43 }
 0x455   :  { %v461_v54 = vpop.permute.xlu0 %460 }
 0x456   :  { %v463_v55 = vmul.f32 %v2777_v53, %v461_v54 }
 0x458   :  { %465 = vrot.lane.b32.xlu1 %v463_v55, %s3015_s3 }
 0x4ca   :  { %v466_v56 = vpop.permute.xlu1 %465 }
 0x4cb   :  { %v468_v57 = vadd.f32 %v466_v56, %v378_v48 }
 0x4cd   :  { %2778 = vtanh.f32 %v468_v57 }
 0x4d7   :  { %v2779_v2 = vpop.eup %2778 }
 0x4d8   :  { %472 = vrot.lane.b32.xlu0 %v2779_v2, %s3017_s4 }
 0x54a   :  { %v473_v4 = vpop.permute.xlu0 %472 }
 0x54b   :  { %v475_v6 = vmul.f32 %v473_v4, %v470_v3 }
 0x54d   :  { %v477_v7 = vadd.f32 %v476_v5, %v475_v6  ;;  %v699_v5 = vld [vmem:[#allocation2 + $0x20] sm:$0xff] }
 0x54f   :  { %479 = vrot.lane.b32.xlu1 %v477_v7, %s3017_s4 }
 0x5c1   :  { %v480_v24 = vpop.permute.xlu1 %479 }
 0x5c2   :  { %483 = vst.msk [vmem:[#allocation3 + $0x8] sm:$0xff] %vm120_vm1, %v480_v24  ;;  %2460 = vmatmul.mubr.msk.f32.vlgmr.msra.gmra.mrb[8].mxu0 %vm120_vm1, %v480_v24 }
 0x5c3   :  { %2670 = vmatpush3.bf16.msra.mxu0 %v3172_v9  ;;  %2481 = vmatprep.mubr.msk.f32.mxu0 %vm3013_vm0, %v3014_v1 }
 0x5c4   :  { %2671 = vmatprep.subr.bf16.mxu0 %v3012_v0 }
 0x5c7   :  { %2673 = vmatpush3.bf16.msra.mxu0 %v3188_v15 }
 0x5c8   :  { %2680 = vmatprep.subr.bf16.mxu0 %v3012_v0 }
 0x695   :  { %v554_v19 = vpop.f32.mrb[8].mxu0 }
 0x696   :  { %v565_v25 = vadd.f32 %v554_v19, %v3210_v18  ;;  %v2461_v26 = vpop.f32.mrb[9].mxu0  ;;  %v558_v28 = vadd.f32 %v554_v19, %v485_v27 }
 0x698   :  { %567 = vrot.lane.b32.xlu0 %v565_v25, %s3015_s3  ;;  %v2261_v29 = vmul.f32 -1.442695, %v558_v28  ;;  %v806_v28 = vld [vmem:[#allocation2 + $0x28] sm:$0xff] }
 0x69a   :  { %2780 = vpow2.f32 %v2261_v29 }
 0x6a4   :  { %v2781_v30 = vpop.eup %2780 }
 0x6a5   :  { %v562_v31 = vadd.f32 1.0, %v2781_v30 }
 0x6a7   :  { %2782 = vrcp.f32 %v562_v31 }
 0x6b1   :  { %v2783_v32 = vpop.eup %2782 }
 0x6b2   :  { %v577_v38 = vsub.f32 1.0, %v2783_v32  ;;  %v583_v40 = vmul.f32 %v2783_v32, %v477_v7 }
 0x70a   :  { %v568_v33 = vpop.permute.xlu0 %567 }
 0x70b   :  { %v570_v34 = vmul.f32 %v2783_v32, %v568_v33 }
 0x70d   :  { %572 = vrot.lane.b32.xlu1 %v570_v34, %s3015_s3 }
 0x77f   :  { %v573_v35 = vpop.permute.xlu1 %572 }
 0x780   :  { %v575_v36 = vadd.f32 %v573_v35, %v485_v27 }
 0x782   :  { %2784 = vtanh.f32 %v575_v36  ;;  %v1135_v36 = vld [vmem:[%s3548_s6] sm:$0xff] }
 0x78c   :  { %v2785_v37 = vpop.eup %2784 }
 0x78d   :  { %579 = vrot.lane.b32.xlu0 %v2785_v37, %s3017_s4  ;;  %v1136_v37 = vld [vmem:[%s3548_s6 + $0x8] sm:$0xff] }
 0x7ff   :  { %v580_v39 = vpop.permute.xlu0 %579 }
 0x800   :  { %v582_v41 = vmul.f32 %v580_v39, %v577_v38  ;;  %v2692_v38 = vpack.c.bf16 %v1136_v37, %v1135_v36 }
 0x802   :  { %v584_v42 = vadd.f32 %v583_v40, %v582_v41 }
 0x804   :  { %586 = vrot.lane.b32.xlu1 %v584_v42, %s3017_s4 }
 0x876   :  { %v587_v43 = vpop.permute.xlu1 %586 }
 0x877   :  { %590 = vst.msk [vmem:[#allocation3 + $0x10] sm:$0xff] %vm120_vm1, %v587_v43  ;;  %2471 = vmatmul.mubr.msk.f32.vlgmr.msra.gmra.mrb[4].mxu1 %vm120_vm1, %v587_v43 }
 0x878   :  { %2676 = vmatpush3.bf16.msra.mxu1 %v3172_v9  ;;  %2492 = vmatprep.mubr.msk.f32.mxu1 %vm3013_vm0, %v3014_v1 }
 0x879   :  { %2677 = vmatprep.subr.bf16.mxu1 %v3012_v0 }
 0x87c   :  { %2679 = vmatpush3.bf16.msra.mxu1 %v3188_v15 }
 0x87d   :  { %2686 = vmatprep.subr.bf16.mxu1 %v3012_v0 }
 0x94a   :  { %v661_v44 = vpop.f32.mrb[4].mxu1 }
 0x94b   :  { %v672_v45 = vadd.f32 %v661_v44, %v3210_v18  ;;  %v2472_v46 = vpop.f32.mrb[5].mxu1  ;;  %v665_v48 = vadd.f32 %v661_v44, %v592_v47 }
 0x94c   :  { %v1138_v46 = vld [vmem:[%s3548_s6 + $0x18] sm:$0xff] }
 0x94d   :  { %674 = vrot.lane.b32.xlu0 %v672_v45, %s3015_s3  ;;  %v2263_v49 = vmul.f32 -1.442695, %v665_v48  ;;  %v1137_v45 = vld [vmem:[%s3548_s6 + $0x10] sm:$0xff] }
 0x94f   :  { %2786 = vpow2.f32 %v2263_v49  ;;  %v1127_v49 = vld [vmem:[#allocation3] sm:$0xff] }
 0x959   :  { %v2787_v50 = vpop.eup %2786 }
 0x95a   :  { %v669_v51 = vadd.f32 1.0, %v2787_v50  ;;  %v1128_v50 = vld [vmem:[#allocation3 + $0x8] sm:$0xff] }
 0x95c   :  { %2788 = vrcp.f32 %v669_v51  ;;  %v1129_v51 = vld [vmem:[#allocation3 + $0x10] sm:$0xff] }
 0x966   :  { %v2789_v52 = vpop.eup %2788 }
 0x967   :  { %v684_v58 = vsub.f32 1.0, %v2789_v52  ;;  %v690_v60 = vmul.f32 %v2789_v52, %v584_v42 }
 0x9bf   :  { %v675_v53 = vpop.permute.xlu0 %674 }
 0x9c0   :  { %v677_v54 = vmul.f32 %v2789_v52, %v675_v53 }
 0x9c2   :  { %679 = vrot.lane.b32.xlu1 %v677_v54, %s3015_s3 }
 0xa34   :  { %v680_v55 = vpop.permute.xlu1 %679 }
 0xa35   :  { %v682_v56 = vadd.f32 %v680_v55, %v592_v47  ;;  %v2696_v47 = vpack.c.bf16 %v1138_v46, %v1137_v45 }
 0xa37   :  { %2790 = vtanh.f32 %v682_v56 }
 0xa41   :  { %v2791_v57 = vpop.eup %2790 }
 0xa42   :  { %686 = vrot.lane.b32.xlu0 %v2791_v57, %s3017_s4 }
 0xab4   :  { %v687_v59 = vpop.permute.xlu0 %686 }
 0xab5   :  { %v689_v61 = vmul.f32 %v687_v59, %v684_v58  ;;  %v3355_v58 = vld [vmem:[#allocation9] ss:$0 sm:$0xff] }
 0xab7   :  { %v691_v62 = vadd.f32 %v690_v60, %v689_v61 }
 0xab9   :  { %693 = vrot.lane.b32.xlu1 %v691_v62, %s3017_s4 }
 0xb2b   :  { %v694_v63 = vpop.permute.xlu1 %693 }
 0xb2c   :  { %697 = vst.msk [vmem:[#allocation3 + $0x18] sm:$0xff] %vm120_vm1, %v694_v63  ;;  %2482 = vmatmul.mubr.msk.f32.vlgmr.msra.gmra.mrb[10].mxu0 %vm120_vm1, %v694_v63 }
 0xb2d   :  { %2682 = vmatpush3.bf16.msra.mxu0 %v3172_v9  ;;  %2503 = vmatprep.mubr.msk.f32.mxu0 %vm3013_vm0, %v3014_v1 }
 0xb2e   :  { %2683 = vmatprep.subr.bf16.mxu0 %v3012_v0 }
 0xb31   :  { %2685 = vmatpush3.bf16.msra.mxu0 %v3188_v15 }
 0xb32   :  { %2693 = vmatprep.subr.bf16.mxu0 %v2692_v38 }
 0xb33   :  { %v1130_v52 = vld [vmem:[#allocation3 + $0x18] sm:$0xff] }
 0xbff   :  { %v768_v2 = vpop.f32.mrb[10].mxu0 }
 0xc00   :  { %v779_v3 = vadd.f32 %v768_v2, %v3210_v18  ;;  %v2483_v4 = vpop.f32.mrb[11].mxu0  ;;  %v772_v6 = vadd.f32 %v768_v2, %v699_v5 }
 0xc02   :  { %781 = vrot.lane.b32.xlu0 %v779_v3, %s3015_s3  ;;  %v2265_v7 = vmul.f32 -1.442695, %v772_v6 }
 0xc04   :  { %2792 = vpow2.f32 %v2265_v7 }
 0xc0e   :  { %v2793_v8 = vpop.eup %2792 }
 0xc0f   :  { %v776_v10 = vadd.f32 1.0, %v2793_v8 }
 0xc11   :  { %2794 = vrcp.f32 %v776_v10  ;;  %v913_v10 = vld [vmem:[#allocation2 + $0x30] sm:$0xff] }
 0xc1b   :  { %v2795_v11 = vpop.eup %2794 }
 0xc1c   :  { %v791_v20 = vsub.f32 1.0, %v2795_v11  ;;  %v797_v22 = vmul.f32 %v2795_v11, %v691_v62 }
 0xc74   :  { %v782_v12 = vpop.permute.xlu0 %781 }
 0xc75   :  { %v784_v13 = vmul.f32 %v2795_v11, %v782_v12 }
 0xc77   :  { %786 = vrot.lane.b32.xlu1 %v784_v13, %s3015_s3 }
 0xce9   :  { %v787_v14 = vpop.permute.xlu1 %786 }
 0xcea   :  { %v789_v16 = vadd.f32 %v787_v14, %v699_v5 }
 0xcec   :  { %2796 = vtanh.f32 %v789_v16 }
 0xcf6   :  { %v2797_v17 = vpop.eup %2796 }
 0xcf7   :  { %793 = vrot.lane.b32.xlu0 %v2797_v17, %s3017_s4 }
 0xd69   :  { %v794_v21 = vpop.permute.xlu0 %793 }
 0xd6a   :  { %v796_v23 = vmul.f32 %v794_v21, %v791_v20 }
 0xd6c   :  { %v798_v24 = vadd.f32 %v797_v22, %v796_v23 }
 0xd6e   :  { %800 = vrot.lane.b32.xlu1 %v798_v24, %s3017_s4 }
 0xde0   :  { %v801_v19 = vpop.permute.xlu1 %800 }
 0xde1   :  { %804 = vst.msk [vmem:[#allocation3 + $0x20] sm:$0xff] %vm120_vm1, %v801_v19  ;;  %2493 = vmatmul.mubr.msk.f32.vlgmr.msra.gmra.mrb[6].mxu1 %vm120_vm1, %v801_v19  ;;  %v1140_v19 = vld [vmem:[#allocation7 + $0x8] sm:$0xff] }
 0xde2   :  { %2688 = vmatpush3.bf16.msra.mxu1 %v3172_v9  ;;  %2514 = vmatprep.mubr.msk.f32.mxu1 %vm3013_vm0, %v3014_v1 }
 0xde3   :  { %2689 = vmatprep.subr.bf16.mxu1 %v3012_v0 }
 0xde6   :  { %2691 = vmatpush3.bf16.msra.mxu1 %v3188_v15 }
 0xde7   :  { %2700 = vmatprep.subr.bf16.mxu1 %v3012_v0 }
 0xde8   :  { %v1131_v53 = vld [vmem:[#allocation3 + $0x20] sm:$0xff] }
 0xeb4   :  { %v875_v25 = vpop.f32.mrb[6].mxu1 }
 0xeb5   :  { %v886_v26 = vadd.f32 %v875_v25, %v3210_v18  ;;  %v2494_v27 = vpop.f32.mrb[7].mxu1  ;;  %v879_v29 = vadd.f32 %v875_v25, %v806_v28 }
 0xeb6   :  { %v1142_v27 = vld [vmem:[#allocation7 + $0x18] sm:$0xff] }
 0xeb7   :  { %888 = vrot.lane.b32.xlu0 %v886_v26, %s3015_s3  ;;  %v2267_v30 = vmul.f32 -1.442695, %v879_v29  ;;  %v1141_v26 = vld [vmem:[#allocation7 + $0x10] sm:$0xff] }
 0xeb9   :  { %2798 = vpow2.f32 %v2267_v30 }
 0xec3   :  { %v2799_v9 = vpop.eup %2798 }
 0xec4   :  { %v883_v31 = vadd.f32 1.0, %v2799_v9  ;;  %v2283_v9 = vld [vmem:[#allocation10] ss:$0 sm:$0xff] }
 0xec6   :  { %2800 = vrcp.f32 %v883_v31 }
 0xed0   :  { %v2801_v32 = vpop.eup %2800 }
 0xed1   :  { %v898_v40 = vsub.f32 1.0, %v2801_v32  ;;  %v904_v42 = vmul.f32 %v2801_v32, %v798_v24  ;;  %v1139_v24 = vld [vmem:[#allocation7] sm:$0xff] }
 0xed2   :  { %v3371_v25 = vpack.c.bf16 %v1140_v19, %v1139_v24 }
 0xf29   :  { %v889_v33 = vpop.permute.xlu0 %888 }
 0xf2a   :  { %v891_v34 = vmul.f32 %v2801_v32, %v889_v33 }
 0xf2c   :  { %893 = vrot.lane.b32.xlu1 %v891_v34, %s3015_s3 }
 0xf9e   :  { %v894_v15 = vpop.permute.xlu1 %893 }
 0xf9f   :  { %v896_v35 = vadd.f32 %v894_v15, %v806_v28  ;;  %v3375_v28 = vpack.c.bf16 %v1142_v27, %v1141_v26  ;;  %v1289_v15 = vld [vmem:[#allocation4 + $0x8] sm:$0xff] }
 0xfa1   :  { %2802 = vtanh.f32 %v896_v35 }
 0xfab   :  { %v2803_v39 = vpop.eup %2802 }
 0xfac   :  { %900 = vrot.lane.b32.xlu0 %v2803_v39, %s3017_s4 }
0x101e   :  { %v901_v41 = vpop.permute.xlu0 %900 }
0x101f   :  { %v903_v43 = vmul.f32 %v901_v41, %v898_v40 }
0x1021   :  { %v3334_v44 = vadd.f32 %v904_v42, %v903_v43 }
0x1023   :  { %907 = vrot.lane.b32.xlu1 %v3334_v44, %s3017_s4 }
0x1095   :  { %v908_v48 = vpop.permute.xlu1 %907 }
0x1096   :  { %911 = vst.msk [vmem:[#allocation3 + $0x28] sm:$0xff] %vm120_vm1, %v908_v48  ;;  %2504 = vmatmul.mubr.msk.f32.vlgmr.msra.gmra.mrb[12].mxu0 %vm120_vm1, %v908_v48 }
0x1097   :  { %2695 = vmatpush3.bf16.msra.mxu0 %v2692_v38  ;;  %2525 = vmatprep.mubr.msk.f32.mxu0 %vm120_vm1, %v1127_v49 }
0x1098   :  { %2697 = vmatprep.subr.bf16.mxu0 %v2696_v47 }
0x109b   :  { %2699 = vmatpush3.bf16.msra.mxu0 %v2696_v47 }
0x109c   :  { %2712 = vmatprep.subr.bf16.mxu0 %v3012_v0 }
0x109d   :  { %v1132_v54 = vld [vmem:[#allocation3 + $0x28] sm:$0xff] }
0x109e   :  { %2526 = vmatmul.mubr.msk.f32.vlgmr.msra.gmra.mrb[14].mxu0 %vm120_vm1, %v1128_v50 }
0x109f   :  { %2528 = vmatprep.mubr.msk.f32.mxu0 %vm120_vm1, %v1129_v51  ;;  %2714 = vmatpush3.bf16.msra.mxu0 %v3371_v25  ;;  %v1020_v51 = vld [vmem:[#allocation2 + $0x38] sm:$0xff] }
0x10a0   :  { %2715 = vmatprep.subr.bf16.mxu0 %v3012_v0 }
0x10a2   :  { %2529 = vmatmul.mubr.msk.f32.gmra.mrb[16].mxu0 %vm120_vm1, %v1130_v52 }
0x10a3   :  { %2531 = vmatprep.mubr.msk.f32.mxu0 %vm120_vm1, %v1131_v53  ;;  %2717 = vmatpush3.bf16.msra.mxu0 %v3375_v28 }
0x10a4   :  { %2724 = vmatprep.subr.bf16.mxu0 %v3012_v0 }
0x10a6   :  { %2532 = vmatmul.mubr.msk.f32.gmra.mrb[18].mxu0 %vm120_vm1, %v1132_v54 }
0x1169   :  { %v982_v55 = vpop.f32.mrb[12].mxu0 }
0x116a   :  { %v993_v56 = vadd.f32 %v982_v55, %v3210_v18  ;;  %v2505_v57 = vpop.f32.mrb[13].mxu0  ;;  %v986_v11 = vadd.f32 %v982_v55, %v913_v10 }
0x116c   :  { %995 = vrot.lane.b32.xlu0 %v993_v56, %s3015_s3  ;;  %v2269_v12 = vmul.f32 -1.442695, %v986_v11 }
0x116e   :  { %2804 = vpow2.f32 %v2269_v12 }
0x1171   :  { %v2527_v59 = vpop.f32.mrb[14].mxu0 }
0x1172   :  { %v1247_v60 = vadd.f32 %v2527_v59, %v3355_v58  ;;  %v1241_v61 = vpop.f32.mrb[15].mxu0 }
0x1173   :  { %v1242_v62 = vadd.f32 %v3355_v58, %v1241_v61 }
0x1174   :  { %1281 = vst.msk [vmem:[#allocation2 + $0x8] sm:$0xff] %vm250_vm2, %v1247_v60 }
0x1175   :  { %1280 = vst.msk [vmem:[#allocation2] sm:$0xff] %vm250_vm2, %v1242_v62  ;;  %v2530_v63 = vpop.f32.mrb[16].mxu0 }
0x1176   :  { %v1257_v2 = vadd.f32 %v2530_v63, %v3355_v58  ;;  %v1251_v3 = vpop.f32.mrb[17].mxu0 }
0x1177   :  { %v1252_v4 = vadd.f32 %v3355_v58, %v1251_v3 }
0x1178   :  { %1283 = vst.msk [vmem:[#allocation2 + $0x18] sm:$0xff] %vm250_vm2, %v1257_v2  ;;  %v2805_v13 = vpop.eup %2804 }
0x1179   :  { %1282 = vst.msk [vmem:[#allocation2 + $0x10] sm:$0xff] %vm250_vm2, %v1252_v4  ;;  %v2533_v5 = vpop.f32.mrb[18].mxu0  ;;  %v990_v14 = vadd.f32 1.0, %v2805_v13 }
0x117a   :  { %v1267_v6 = vadd.f32 %v2533_v5, %v3355_v58  ;;  %v1261_v7 = vpop.f32.mrb[19].mxu0 }
0x117b   :  { %v1262_v8 = vadd.f32 %v3355_v58, %v1261_v7  ;;  %2806 = vrcp.f32 %v990_v14  ;;  %v1402_v24 = vld [vmem:[#allocation2 + $0x8] sm:$0xff] }
0x117c   :  { %1285 = vst.msk [vmem:[#allocation2 + $0x28] sm:$0xff] %vm250_vm2, %v1267_v6  ;;  %v1290_v42 = vld [vmem:[#allocation2] sm:$0xff] }
0x117d   :  { %1284 = vst.msk [vmem:[#allocation2 + $0x20] sm:$0xff] %vm250_vm2, %v1262_v8 }
0x1185   :  { %v2807_v16 = vpop.eup %2806 }
0x1186   :  { %v1005_v29 = vsub.f32 1.0, %v2807_v16  ;;  %v1011_v31 = vmul.f32 %v2807_v16, %v3334_v44 }
0x11de   :  { %v996_v17 = vpop.permute.xlu0 %995 }
0x11df   :  { %v998_v20 = vmul.f32 %v2807_v16, %v996_v17 }
0x11e1   :  { %1000 = vrot.lane.b32.xlu1 %v998_v20, %s3015_s3 }
0x1253   :  { %v1001_v21 = vpop.permute.xlu1 %1000 }
0x1254   :  { %v1003_v22 = vadd.f32 %v1001_v21, %v913_v10 }
0x1256   :  { %2808 = vtanh.f32 %v1003_v22 }
0x1260   :  { %v2809_v23 = vpop.eup %2808 }
0x1261   :  { %1007 = vrot.lane.b32.xlu0 %v2809_v23, %s3017_s4 }
0x1265   :  { %1376 = vrot.lane.b32.xlu0 %v2283_v9, %s3015_s3 }
0x12d3   :  { %v1008_v30 = vpop.permute.xlu0 %1007 }
0x12d4   :  { %v1010_v32 = vmul.f32 %v1008_v30, %v1005_v29 }
0x12d6   :  { %v3381_v33 = vadd.f32 %v1011_v31, %v1010_v32 }
0x12d7   :  { %v3401_v38 = vpop.permute.xlu0 %1376 }
0x12d8   :  { %1014 = vrot.lane.b32.xlu1 %v3381_v33, %s3017_s4 }
0x134a   :  { %v1015_v34 = vpop.permute.xlu1 %1014 }
0x134b   :  { %1018 = vst.msk [vmem:[#allocation3 + $0x30] sm:$0xff] %vm120_vm1, %v1015_v34  ;;  %2515 = vmatmul.mubr.msk.f32.vlgmr.msra.gmra.mrb[8].mxu1 %vm120_vm1, %v1015_v34 }
0x134c   :  { %2702 = vmatpush3.bf16.msra.mxu1 %v3371_v25  ;;  %2545 = vmatprep.mubr.msk.f32.mxu1 %vm3013_vm0, %v3014_v1 }
0x134d   :  { %2703 = vmatprep.subr.bf16.mxu1 %v3012_v0 }
0x1350   :  { %2705 = vmatpush3.bf16.msra.mxu1 %v3375_v28 }
0x1351   :  { %2706 = vmatprep.subr.bf16.mxu1 %v3012_v0 }
0x1352   :  { %v1133_v35 = vld [vmem:[#allocation3 + $0x30] sm:$0xff] }
0x1353   :  { %2546 = vmatmul.mubr.msk.f32.vlgmr.msra.gmra.mrb[10].mxu1 %vm120_vm1, %v1289_v15  ;;  %2534 = vmatprep.mubr.msk.f32.mxu0 %vm120_vm1, %v1133_v35 }
0x1354   :  { %2708 = vmatpush3.bf16.msra.mxu1 %v3371_v25  ;;  %2556 = vmatprep.mubr.msk.f32.mxu1 %vm3013_vm0, %v3014_v1 }
0x1355   :  { %2709 = vmatprep.subr.bf16.mxu1 %v3012_v0 }
0x1358   :  { %2711 = vmatpush3.bf16.msra.mxu1 %v3375_v28 }
0x1359   :  { %2718 = vmatprep.subr.bf16.mxu1 %v3012_v0 }
0x141e   :  { %v1089_v36 = vpop.f32.mrb[8].mxu1 }
0x141f   :  { %v2516_v37 = vpop.f32.mrb[9].mxu1  ;;  %v1100_v50 = vadd.f32 %v1089_v36, %v3210_v18  ;;  %v1093_v52 = vadd.f32 %v1089_v36, %v1020_v51 }
0x1421   :  { %v2271_v53 = vmul.f32 -1.442695, %v1093_v52 }
0x1426   :  { %v1360_v39 = vpop.f32.mrb[10].mxu1 }
0x1427   :  { %v1379_v40 = vadd.f32 %v3401_v38, %v1360_v39  ;;  %v2547_v41 = vpop.f32.mrb[11].mxu1  ;;  %v1364_v43 = vadd.f32 %v1360_v39, %v1290_v42 }
0x1429   :  { %1381 = vrot.lane.b32.xlu1 %v1379_v40, %s3015_s3  ;;  %v2282_v44 = vmul.f32 -1.442695, %v1364_v43 }
0x142b   :  { %2810 = vpow2.f32 %v2282_v44 }
0x1435   :  { %v2811_v45 = vpop.eup %2810 }
0x1436   :  { %v1368_v46 = vadd.f32 1.0, %v2811_v45 }
0x1438   :  { %2812 = vrcp.f32 %v1368_v46 }
0x1439   :  { %2814 = vpow2.f32 %v2271_v53 }
0x1442   :  { %v2813_v47 = vpop.eup %2812 }
0x1443   :  { %v2815_v54 = vpop.eup %2814  ;;  %v1391_v3 = vsub.f32 1.0, %v2813_v47 }
0x1444   :  { %v1097_v55 = vadd.f32 1.0, %v2815_v54 }
0x1446   :  { %2816 = vrcp.f32 %v1097_v55 }
0x1450   :  { %v2817_v60 = vpop.eup %2816 }
0x1451   :  { %v1112_v11 = vsub.f32 1.0, %v2817_v60  ;;  %v1118_v13 = vmul.f32 %v2817_v60, %v3381_v33 }
0x149b   :  { %v1382_v48 = vpop.permute.xlu1 %1381 }
0x149c   :  { %v1384_v49 = vmul.f32 %v2813_v47, %v1382_v48 }
0x149e   :  { %1386 = vrot.lane.b32.xlu0 %v1384_v49, %s3015_s3 }
0x14a2   :  { %1397 = vrot.lane.b32.xlu0 %v1289_v15, %s3016_s9 }
0x14a6   :  { %1102 = vrot.lane.b32.xlu0 %v1100_v50, %s3015_s3 }
0x1510   :  { %v1387_v56 = vpop.permute.xlu0 %1386 }
0x1511   :  { %v1389_v57 = vadd.f32 %v1387_v56, %v1290_v42 }
0x1513   :  { %2818 = vtanh.f32 %v1389_v57 }
0x1514   :  { %v1398_v59 = vpop.permute.xlu0 %1397 }
0x1515   :  { %v1400_v5 = vmul.f32 %v2813_v47, %v1398_v59  ;;  %v1505_v47 = vld [vmem:[#allocation2 + $0x10] sm:$0xff] }
0x1518   :  { %v1103_v61 = vpop.permute.xlu0 %1102 }
0x1519   :  { %v1105_v62 = vmul.f32 %v2817_v60, %v1103_v61 }
0x151b   :  { %1107 = vrot.lane.b32.xlu0 %v1105_v62, %s3015_s3 }
0x151d   :  { %v2819_v63 = vpop.eup %2818 }
0x151e   :  { %1393 = vrot.lane.b32.xlu1 %v2819_v63, %s3017_s4 }
0x158d   :  { %v1108_v18 = vpop.permute.xlu0 %1107 }
0x158e   :  { %v1110_v2 = vadd.f32 %v1108_v18, %v1020_v51 }
0x1590   :  { %2820 = vtanh.f32 %v1110_v2  ;;  %v1394_v4 = vpop.permute.xlu1 %1393 }
0x1591   :  { %v1396_v6 = vmul.f32 %v1394_v4, %v1391_v3 }
0x1593   :  { %v1401_v7 = vadd.f32 %v1400_v5, %v1396_v6  ;;  %v1608_v5 = vld [vmem:[#allocation2 + $0x18] sm:$0xff] }
0x1595   :  { %1404 = vrot.lane.b32.xlu1 %v1401_v7, %s3017_s4 }
0x159a   :  { %v2821_v8 = vpop.eup %2820 }
0x159b   :  { %1114 = vrot.lane.b32.xlu0 %v2821_v8, %s3017_s4 }
0x1607   :  { %v1405_v10 = vpop.permute.xlu1 %1404 }
0x1608   :  { %2557 = vmatmul.mubr.msk.f32.vlgmr.msra.gmra.mrb[12].mxu1 %vm120_vm1, %v1405_v10 }
0x1609   :  { %2720 = vmatpush3.bf16.msra.mxu1 %v3371_v25  ;;  %2578 = vmatprep.mubr.msk.f32.mxu1 %vm3013_vm0, %v3014_v1 }
0x160a   :  { %2721 = vmatprep.subr.bf16.mxu1 %v3012_v0 }
0x160d   :  { %v1115_v12 = vpop.permute.xlu0 %1114  ;;  %2723 = vmatpush3.bf16.msra.mxu1 %v3375_v28 }
0x160e   :  { %v1117_v14 = vmul.f32 %v1115_v12, %v1112_v11  ;;  %2730 = vmatprep.subr.bf16.mxu1 %v3012_v0 }
0x1610   :  { %v1119_v16 = vadd.f32 %v1118_v13, %v1117_v14 }
0x1612   :  { %1121 = vrot.lane.b32.xlu0 %v1119_v16, %s3017_s4 }
0x1684   :  { %v1122_v17 = vpop.permute.xlu0 %1121 }
0x1685   :  { %1125 = vst.msk [vmem:[#allocation3 + $0x38] sm:$0xff] %vm120_vm1, %v1122_v17  ;;  %1126 = vst.msk [vmem:[#allocation13] sm:$0xff] %vm120_vm1, %v1122_v17 }
0x168c   :  { %v1134_v20 = vld [vmem:[#allocation3 + $0x38] sm:$0xff] }
0x168d   :  { %2535 = vmatmul.mubr.msk.f32.gmra.mrb[20].mxu0 %vm120_vm1, %v1134_v20 }
0x168e   :  { %2567 = vmatprep.mubr.msk.f32.mxu0 %vm3013_vm0, %v3014_v1 }
0x16db   :  { %v1474_v21 = vpop.f32.mrb[12].mxu1 }
0x16dc   :  { %v1485_v22 = vadd.f32 %v1474_v21, %v3401_v38  ;;  %v2558_v23 = vpop.f32.mrb[13].mxu1  ;;  %v1478_v19 = vadd.f32 %v1474_v21, %v1402_v24 }
0x16de   :  { %1487 = vrot.lane.b32.xlu1 %v1485_v22, %s3015_s3  ;;  %v2285_v26 = vmul.f32 -1.442695, %v1478_v19 }
0x16e0   :  { %2822 = vpow2.f32 %v2285_v26 }
0x16ea   :  { %v2823_v27 = vpop.eup %2822 }
0x16eb   :  { %v1482_v29 = vadd.f32 1.0, %v2823_v27 }
0x16ed   :  { %2824 = vrcp.f32 %v1482_v29 }
0x16f7   :  { %v2825_v30 = vpop.eup %2824 }
0x16f8   :  { %v1497_v39 = vsub.f32 1.0, %v2825_v30  ;;  %v1503_v41 = vmul.f32 %v2825_v30, %v1401_v7 }
0x1750   :  { %v1488_v9 = vpop.permute.xlu1 %1487 }
0x1751   :  { %v1490_v31 = vmul.f32 %v2825_v30, %v1488_v9  ;;  %v1711_v30 = vld [vmem:[#allocation2 + $0x20] sm:$0xff] }
0x1753   :  { %1492 = vrot.lane.b32.xlu1 %v1490_v31, %s3015_s3 }
0x1760   :  { %v2536_v32 = vpop.f32.mrb[20].mxu0 }
0x1761   :  { %v1277_v33 = vadd.f32 %v2536_v32, %v3355_v58  ;;  %v1271_v34 = vpop.f32.mrb[21].mxu0 }
0x1762   :  { %v1272_v15 = vadd.f32 %v3355_v58, %v1271_v34 }
0x1763   :  { %1287 = vst.msk [vmem:[#allocation2 + $0x38] sm:$0xff] %vm250_vm2, %v1277_v33 }
0x1764   :  { %1286 = vst.msk [vmem:[#allocation2 + $0x30] sm:$0xff] %vm250_vm2, %v1272_v15 }
0x17c5   :  { %v1493_v35 = vpop.permute.xlu1 %1492 }
0x17c6   :  { %v1495_v36 = vadd.f32 %v1493_v35, %v1402_v24 }
0x17c8   :  { %2826 = vtanh.f32 %v1495_v36 }
0x17d2   :  { %v2827_v37 = vpop.eup %2826 }
0x17d3   :  { %1499 = vrot.lane.b32.xlu1 %v2827_v37, %s3017_s4 }
0x1845   :  { %v1500_v40 = vpop.permute.xlu1 %1499 }
0x1846   :  { %v1502_v42 = vmul.f32 %v1500_v40, %v1497_v39 }
0x1848   :  { %v1504_v43 = vadd.f32 %v1503_v41, %v1502_v42 }
0x184a   :  { %1507 = vrot.lane.b32.xlu1 %v1504_v43, %s3017_s4 }
0x18bc   :  { %v1508_v44 = vpop.permute.xlu1 %1507 }
0x18bd   :  { %2568 = vmatmul.mubr.msk.f32.vlgmr.msra.gmra.mrb[22].mxu0 %vm120_vm1, %v1508_v44 }
0x18be   :  { %2726 = vmatpush3.bf16.msra.mxu0 %v3371_v25  ;;  %2589 = vmatprep.mubr.msk.f32.mxu0 %vm3013_vm0, %v3014_v1 }
0x18bf   :  { %2727 = vmatprep.subr.bf16.mxu0 %v3012_v0 }
0x18c2   :  { %2729 = vmatpush3.bf16.msra.mxu0 %v3375_v28 }
0x18c3   :  { %2736 = vmatprep.subr.bf16.mxu0 %v3012_v0 }
0x1990   :  { %v1577_v58 = vpop.f32.mrb[22].mxu0 }
0x1991   :  { %v1588_v45 = vadd.f32 %v1577_v58, %v3401_v38  ;;  %v2569_v46 = vpop.f32.mrb[23].mxu0  ;;  %v1581_v48 = vadd.f32 %v1577_v58, %v1505_v47 }
0x1993   :  { %1590 = vrot.lane.b32.xlu0 %v1588_v45, %s3015_s3  ;;  %v2287_v49 = vmul.f32 -1.442695, %v1581_v48  ;;  %v1814_v48 = vld [vmem:[#allocation2 + $0x28] sm:$0xff] }
0x1995   :  { %2828 = vpow2.f32 %v2287_v49 }
0x199f   :  { %v2829_v50 = vpop.eup %2828 }
0x19a0   :  { %v1585_v51 = vadd.f32 1.0, %v2829_v50 }
0x19a2   :  { %2830 = vrcp.f32 %v1585_v51 }
0x19ac   :  { %v2831_v52 = vpop.eup %2830 }
0x19ad   :  { %v1600_v59 = vsub.f32 1.0, %v2831_v52  ;;  %v1606_v61 = vmul.f32 %v2831_v52, %v1504_v43 }
0x1a05   :  { %v1591_v53 = vpop.permute.xlu0 %1590 }
0x1a06   :  { %v1593_v54 = vmul.f32 %v2831_v52, %v1591_v53 }
0x1a08   :  { %1595 = vrot.lane.b32.xlu1 %v1593_v54, %s3015_s3 }
0x1a7a   :  { %v1596_v55 = vpop.permute.xlu1 %1595 }
0x1a7b   :  { %v1598_v56 = vadd.f32 %v1596_v55, %v1505_v47 }
0x1a7d   :  { %2832 = vtanh.f32 %v1598_v56 }
0x1a87   :  { %v2833_v57 = vpop.eup %2832 }
0x1a88   :  { %1602 = vrot.lane.b32.xlu0 %v2833_v57, %s3017_s4 }
0x1afa   :  { %v1603_v60 = vpop.permute.xlu0 %1602 }
0x1afb   :  { %v1605_v62 = vmul.f32 %v1603_v60, %v1600_v59 }
0x1afd   :  { %v1607_v63 = vadd.f32 %v1606_v61, %v1605_v62 }
0x1aff   :  { %1610 = vrot.lane.b32.xlu1 %v1607_v63, %s3017_s4 }
0x1b71   :  { %v1611_v18 = vpop.permute.xlu1 %1610 }
0x1b72   :  { %2579 = vmatmul.mubr.msk.f32.vlgmr.msra.gmra.mrb[14].mxu1 %vm120_vm1, %v1611_v18 }
0x1b73   :  { %2732 = vmatpush3.bf16.msra.mxu1 %v3371_v25  ;;  %2600 = vmatprep.mubr.msk.f32.mxu1 %vm3013_vm0, %v3014_v1 }
0x1b74   :  { %2733 = vmatprep.subr.bf16.mxu1 %v3012_v0 }
0x1b77   :  { %2735 = vmatpush3.bf16.msra.mxu1 %v3375_v28 }
0x1b78   :  { %2742 = vmatprep.subr.bf16.mxu1 %v3012_v0 }
0x1c45   :  { %v1680_v2 = vpop.f32.mrb[14].mxu1 }
0x1c46   :  { %v1691_v3 = vadd.f32 %v1680_v2, %v3401_v38  ;;  %v2580_v4 = vpop.f32.mrb[15].mxu1  ;;  %v1684_v6 = vadd.f32 %v1680_v2, %v1608_v5 }
0x1c47   :  { %v1917_v4 = vld [vmem:[#allocation2 + $0x30] sm:$0xff] }
0x1c48   :  { %1693 = vrot.lane.b32.xlu0 %v1691_v3, %s3015_s3  ;;  %v2289_v7 = vmul.f32 -1.442695, %v1684_v6 }
0x1c4a   :  { %2834 = vpow2.f32 %v2289_v7 }
0x1c54   :  { %v2835_v8 = vpop.eup %2834 }
0x1c55   :  { %v1688_v10 = vadd.f32 1.0, %v2835_v8 }
0x1c57   :  { %2836 = vrcp.f32 %v1688_v10 }
0x1c61   :  { %v2837_v11 = vpop.eup %2836 }
0x1c62   :  { %v1703_v20 = vsub.f32 1.0, %v2837_v11  ;;  %v1709_v22 = vmul.f32 %v2837_v11, %v1607_v63 }
0x1cba   :  { %v1694_v12 = vpop.permute.xlu0 %1693 }
0x1cbb   :  { %v1696_v13 = vmul.f32 %v2837_v11, %v1694_v12 }
0x1cbd   :  { %1698 = vrot.lane.b32.xlu1 %v1696_v13, %s3015_s3 }
0x1d2f   :  { %v1699_v14 = vpop.permute.xlu1 %1698 }
0x1d30   :  { %v1701_v16 = vadd.f32 %v1699_v14, %v1608_v5 }
0x1d32   :  { %2838 = vtanh.f32 %v1701_v16 }
0x1d3c   :  { %v2839_v17 = vpop.eup %2838 }
0x1d3d   :  { %1705 = vrot.lane.b32.xlu0 %v2839_v17, %s3017_s4 }
0x1daf   :  { %v1706_v21 = vpop.permute.xlu0 %1705 }
0x1db0   :  { %v1708_v23 = vmul.f32 %v1706_v21, %v1703_v20 }
0x1db2   :  { %v1710_v24 = vadd.f32 %v1709_v22, %v1708_v23 }
0x1db4   :  { %1713 = vrot.lane.b32.xlu1 %v1710_v24, %s3017_s4 }
0x1e26   :  { %v1714_v19 = vpop.permute.xlu1 %1713 }
0x1e27   :  { %2590 = vmatmul.mubr.msk.f32.vlgmr.msra.gmra.mrb[24].mxu0 %vm120_vm1, %v1714_v19 }
0x1e28   :  { %2738 = vmatpush3.bf16.msra.mxu0 %v3371_v25  ;;  %2611 = vmatprep.mubr.msk.f32.mxu0 %vm3013_vm0, %v3014_v1 }
0x1e29   :  { %2739 = vmatprep.subr.bf16.mxu0 %v3012_v0 }
0x1e2c   :  { %2741 = vmatpush3.bf16.msra.mxu0 %v3375_v28 }
0x1e2d   :  { %2748 = vmatprep.subr.bf16.mxu0 %v3012_v0 }
0x1efa   :  { %v1783_v26 = vpop.f32.mrb[24].mxu0 }
0x1efb   :  { %v1794_v27 = vadd.f32 %v1783_v26, %v3401_v38  ;;  %v2591_v29 = vpop.f32.mrb[25].mxu0  ;;  %v1787_v9 = vadd.f32 %v1783_v26, %v1711_v30 }
0x1efd   :  { %1796 = vrot.lane.b32.xlu0 %v1794_v27, %s3015_s3  ;;  %v2291_v31 = vmul.f32 -1.442695, %v1787_v9  ;;  %v2020_v27 = vld [vmem:[#allocation2 + $0x38] sm:$0xff] }
0x1eff   :  { %2840 = vpow2.f32 %v2291_v31 }
0x1f09   :  { %v2841_v32 = vpop.eup %2840 }
0x1f0a   :  { %v1791_v33 = vadd.f32 1.0, %v2841_v32 }
0x1f0c   :  { %2842 = vrcp.f32 %v1791_v33 }
0x1f16   :  { %v2843_v34 = vpop.eup %2842 }
0x1f17   :  { %v1806_v40 = vsub.f32 1.0, %v2843_v34  ;;  %v1812_v42 = vmul.f32 %v2843_v34, %v1710_v24 }
0x1f6f   :  { %v1797_v15 = vpop.permute.xlu0 %1796 }
0x1f70   :  { %v1799_v35 = vmul.f32 %v2843_v34, %v1797_v15 }
0x1f72   :  { %1801 = vrot.lane.b32.xlu1 %v1799_v35, %s3015_s3 }
0x1fe4   :  { %v1802_v36 = vpop.permute.xlu1 %1801 }
0x1fe5   :  { %v1804_v37 = vadd.f32 %v1802_v36, %v1711_v30  ;;  %v2130_v36 = vld [vmem:[%s3552_s10 + $0x8] sm:$0xff] }
0x1fe7   :  { %2844 = vtanh.f32 %v1804_v37  ;;  %v2131_v37 = vld [vmem:[%s3552_s10 + $0x10] sm:$0xff] }
0x1ff1   :  { %v2845_v39 = vpop.eup %2844 }
0x1ff2   :  { %1808 = vrot.lane.b32.xlu0 %v2845_v39, %s3017_s4 }
0x2064   :  { %v1809_v41 = vpop.permute.xlu0 %1808 }
0x2065   :  { %v1811_v43 = vmul.f32 %v1809_v41, %v1806_v40  ;;  %v2132_v40 = vld [vmem:[%s3552_s10 + $0x18] sm:$0xff] }
0x2066   :  { %v2752_v41 = vpack.c.bf16 %v2132_v40, %v2131_v37 }
0x2067   :  { %v1813_v44 = vadd.f32 %v1812_v42, %v1811_v43 }
0x2069   :  { %1816 = vrot.lane.b32.xlu1 %v1813_v44, %s3017_s4 }
0x20db   :  { %v1817_v58 = vpop.permute.xlu1 %1816 }
0x20dc   :  { %2601 = vmatmul.mubr.msk.f32.vlgmr.msra.gmra.mrb[16].mxu1 %vm120_vm1, %v1817_v58 }
0x20dd   :  { %2744 = vmatpush3.bf16.msra.mxu1 %v3371_v25  ;;  %2622 = vmatprep.mubr.msk.f32.mxu1 %vm3013_vm0, %v3014_v1 }
0x20de   :  { %2745 = vmatprep.subr.bf16.mxu1 %v3012_v0 }
0x20e1   :  { %2747 = vmatpush3.bf16.msra.mxu1 %v3375_v28 }
0x21af   :  { %v1886_v45 = vpop.f32.mrb[16].mxu1 }
0x21b0   :  { %v1897_v46 = vadd.f32 %v1886_v45, %v3401_v38  ;;  %v2602_v47 = vpop.f32.mrb[17].mxu1  ;;  %v1890_v49 = vadd.f32 %v1886_v45, %v1814_v48 }
0x21b2   :  { %1899 = vrot.lane.b32.xlu0 %v1897_v46, %s3015_s3  ;;  %v2293_v50 = vmul.f32 -1.442695, %v1890_v49 }
0x21b4   :  { %2846 = vpow2.f32 %v2293_v50 }
0x21be   :  { %v2847_v51 = vpop.eup %2846 }
0x21bf   :  { %v1894_v52 = vadd.f32 1.0, %v2847_v51 }
0x21c1   :  { %2848 = vrcp.f32 %v1894_v52 }
0x21cb   :  { %v2849_v25 = vpop.eup %2848 }
0x21cc   :  { %v1909_v57 = vsub.f32 1.0, %v2849_v25  ;;  %v1915_v60 = vmul.f32 %v2849_v25, %v1813_v44 }
0x2224   :  { %v1900_v53 = vpop.permute.xlu0 %1899 }
0x2225   :  { %v1902_v54 = vmul.f32 %v2849_v25, %v1900_v53 }
0x2227   :  { %1904 = vrot.lane.b32.xlu1 %v1902_v54, %s3015_s3 }
0x2299   :  { %v1905_v55 = vpop.permute.xlu1 %1904 }
0x229a   :  { %v1907_v28 = vadd.f32 %v1905_v55, %v1814_v48 }
0x229c   :  { %2850 = vtanh.f32 %v1907_v28 }
0x22a6   :  { %v2851_v56 = vpop.eup %2850 }
0x22a7   :  { %1911 = vrot.lane.b32.xlu0 %v2851_v56, %s3017_s4 }
0x2319   :  { %v1912_v59 = vpop.permute.xlu0 %1911 }
0x231a   :  { %v1914_v61 = vmul.f32 %v1912_v59, %v1909_v57 }
0x231c   :  { %v1916_v62 = vadd.f32 %v1915_v60, %v1914_v61 }
0x231e   :  { %1919 = vrot.lane.b32.xlu1 %v1916_v62, %s3017_s4 }
0x2390   :  { %v1920_v63 = vpop.permute.xlu1 %1919 }
0x2391   :  { %2612 = vmatmul.mubr.msk.f32.vlgmr.msra.gmra.mrb[26].mxu0 %vm120_vm1, %v1920_v63 }
0x2392   :  { %2633 = vmatprep.mubr.msk.f32.mxu0 %vm3013_vm0, %v3014_v1 }
0x2464   :  { %v1989_v18 = vpop.f32.mrb[26].mxu0 }
0x2465   :  { %v2000_v2 = vadd.f32 %v1989_v18, %v3401_v38  ;;  %v2613_v3 = vpop.f32.mrb[27].mxu0  ;;  %v1993_v5 = vadd.f32 %v1989_v18, %v1917_v4 }
0x2467   :  { %2002 = vrot.lane.b32.xlu0 %v2000_v2, %s3015_s3  ;;  %v2295_v6 = vmul.f32 -1.442695, %v1993_v5 }
0x2469   :  { %2852 = vpow2.f32 %v2295_v6 }
0x2473   :  { %v2853_v7 = vpop.eup %2852 }
0x2474   :  { %v1997_v8 = vadd.f32 1.0, %v2853_v7 }
0x2476   :  { %2854 = vrcp.f32 %v1997_v8 }
0x2480   :  { %v2855_v10 = vpop.eup %2854 }
0x2481   :  { %v2012_v16 = vsub.f32 1.0, %v2855_v10  ;;  %v2018_v20 = vmul.f32 %v2855_v10, %v1916_v62 }
0x24d9   :  { %v2003_v11 = vpop.permute.xlu0 %2002 }
0x24da   :  { %v2005_v12 = vmul.f32 %v2855_v10, %v2003_v11 }
0x24dc   :  { %2007 = vrot.lane.b32.xlu1 %v2005_v12, %s3015_s3 }
0x254e   :  { %v2008_v13 = vpop.permute.xlu1 %2007 }
0x254f   :  { %v2010_v1 = vadd.f32 %v2008_v13, %v1917_v4 }
0x2551   :  { %2856 = vtanh.f32 %v2010_v1 }
0x255b   :  { %v2857_v14 = vpop.eup %2856 }
0x255c   :  { %2014 = vrot.lane.b32.xlu0 %v2857_v14, %s3017_s4 }
0x25ce   :  { %v2015_v17 = vpop.permute.xlu0 %2014 }
0x25cf   :  { %v2017_v21 = vmul.f32 %v2015_v17, %v2012_v16 }
0x25d1   :  { %v2019_v22 = vadd.f32 %v2018_v20, %v2017_v21 }
0x25d3   :  { %2022 = vrot.lane.b32.xlu1 %v2019_v22, %s3017_s4 }
0x2645   :  { %v2023_v23 = vpop.permute.xlu1 %2022 }
0x2646   :  { %2623 = vmatmul.mubr.msk.f32.vlgmr.msra.gmra.mrb[18].mxu1 %vm120_vm1, %v2023_v23 }
0x2719   :  { %v2092_v24 = vpop.f32.mrb[18].mxu1 }
0x271a   :  { %v2103_v19 = vadd.f32 %v2092_v24, %v3401_v38  ;;  %v2624_v26 = vpop.f32.mrb[19].mxu1  ;;  %v2096_v29 = vadd.f32 %v2092_v24, %v2020_v27  ;;  %v2129_v38 = vld [vmem:[%s3552_s10] sm:$0xff]  ;;  %s3018_s10 = smov [#allocation13]  }
0x271b   :  { %v2749_v39 = vpack.c.bf16 %v2130_v36, %v2129_v38 }
0x271c   :  { %2105 = vrot.lane.b32.xlu0 %v2103_v19, %s3015_s3  ;;  %v2297_v30 = vmul.f32 -1.442695, %v2096_v29 }
0x271d   :  { %2750 = vmatpush3.bf16.msra.mxu0 %v2749_v39 }
0x271e   :  { %2858 = vpow2.f32 %v2297_v30  ;;  %2751 = vmatprep.subr.bf16.mxu0 %v3012_v0 }
0x2721   :  { %2753 = vmatpush3.bf16.msra.mxu0 %v2752_v41 }
0x2728   :  { %v2859_v9 = vpop.eup %2858 }
0x2729   :  { %v2100_v31 = vadd.f32 1.0, %v2859_v9 }
0x272b   :  { %2860 = vrcp.f32 %v2100_v31 }
0x2735   :  { %v2861_v32 = vpop.eup %2860 }
0x2736   :  { %v2115_v43 = vsub.f32 1.0, %v2861_v32  ;;  %v2121_v58 = vmul.f32 %v2861_v32, %v2019_v22 }
0x278e   :  { %v2106_v33 = vpop.permute.xlu0 %2105 }
0x278f   :  { %v2108_v34 = vmul.f32 %v2861_v32, %v2106_v33 }
0x2791   :  { %2110 = vrot.lane.b32.xlu1 %v2108_v34, %s3015_s3  ;;  %s2228_s3 = sshll.u32 %s3018_s10, 4  ;;  %s2229_s3 = int_to_ptr.vmem [resolvable:$true] %s2228_s3 }
0x2792   :  { %s2952_s26 = scalar_lea.vmem %s2229_s3, 256  ;;  %p2957_p5 = scmp.lt.s32.totalorder %s2229_s3, %s2229_s3 }
0x2793   :  { %p2953_p4 = scmp.ne.s32.totalorder %s2229_s3, %s2952_s26  ;;  %p2958_p6 = scmp.lt.s32.totalorder %s2952_s26, %s2952_s26 }
0x2795   :  { %p2959_p7 = por %p2958_p6, %p2957_p5 }
0x2797   :  { %p2960_p8 = pnand %p2959_p7, %p2953_p4 }
0x2803   :  { %v2111_v15 = vpop.permute.xlu1 %2110 }
0x2804   :  { %v2113_v35 = vadd.f32 %v2111_v15, %v2020_v27 }
0x2806   :  { %2862 = vtanh.f32 %v2113_v35 }
0x2810   :  { %v2863_v42 = vpop.eup %2862 }
0x2811   :  { %2117 = vrot.lane.b32.xlu0 %v2863_v42, %s3017_s4 }
0x2883   :  { %v2118_v44 = vpop.permute.xlu0 %2117 }
0x2884   :  { %v2120_v45 = vmul.f32 %v2118_v44, %v2115_v43 }
0x2886   :  { %v2122_v46 = vadd.f32 %v2121_v58, %v2120_v45 }
0x2888   :  { %2124 = vrot.lane.b32.xlu1 %v2122_v46, %s3017_s4 }
0x28fa   :  { %v2125_v47 = vpop.permute.xlu1 %2124 }
0x28fb   :  { %2128 = vst.msk [vmem:[#allocation13 + $0x8] sm:$0xff] %vm120_vm1, %v2125_v47  ;;  %2634 = vmatmul.mubr.msk.f32.vlgmr.msra.gmra.mrb[28].mxu0 %vm120_vm1, %v2125_v47 }
0x28fc   :  { %2963 = shalt.err (!%p2960_p8)
}
0x28fd   :  { %s2964_s23 = scalar_lea.hbm %s3555_s13, 256 }
0x28fe   :  { %p2965_p9 = scmp.ne.s32.totalorder %s3555_s13, %s2964_s23  ;;  %p2968_p10 = scmp.lt.u32.totalorder %s2964_s23, %s3555_s13 }
0x2900   :  { %p2970_p11 = pnand %p2968_p10, %p2965_p9 }
0x2902   :  { %2973 = shalt.err (!%p2970_p11)
}
0x2903   :  { %2234 = dma.vmem_to_hbm [thread:$0]  %s2229_s3, 256, %s3555_s13, [#allocation14], %s3008_s20, %s3008_s20, %s3009_s21  }
0x2904   :  { %v2298_v0 = vld [vmem:[%s3553_s11] ss:$0 sm:$0xff]  ;;  %s3019_s2 = smov [#allocation12]  }
0x2905   :  { %s2219_s30 = sshll.u32 %s3019_s2, 4  ;;  %s2220_s30 = int_to_ptr.vmem [resolvable:$true] %s2219_s30 }
0x2906   :  { %s2974_s14 = scalar_lea.vmem %s2220_s30, 128  ;;  %p2979_p13 = scmp.lt.s32.totalorder %s2220_s30, %s2220_s30 }
0x2907   :  { %p2975_p12 = scmp.ne.s32.totalorder %s2220_s30, %s2974_s14  ;;  %p2980_p0 = scmp.lt.s32.totalorder %s2974_s14, %s2974_s14 }
0x2909   :  { %p2981_p1 = por %p2980_p0, %p2979_p13 }
0x290b   :  { %p2982_p2 = pnand %p2981_p1, %p2975_p12 }
0x29ce   :  { %v2208_v48 = vpop.f32.mrb[28].mxu0 }
0x29cf   :  { %v2209_v49 = vadd.f32 %v2298_v0, %v2208_v48  ;;  %v2635_v50 = vpop.f32.mrb[29].mxu0 }
0x29d1   :  { %2212 = vst [vmem:[#allocation12] sm:$0xff] %v2209_v49 }
0x29d2   :  { %2985 = shalt.err (!%p2982_p2)
}
0x29d3   :  { %s2986_s20 = scalar_lea.hbm %s3554_s12, 128 }
0x29d4   :  { %p2987_p3 = scmp.ne.s32.totalorder %s3554_s12, %s2986_s20  ;;  %p2990_p4 = scmp.lt.u32.totalorder %s2986_s20, %s3554_s12 }
0x29d6   :  { %p2992_p5 = pnand %p2990_p4, %p2987_p3 }
0x29d8   :  { %2995 = shalt.err (!%p2992_p5)
}
0x29d9   :  { %2222 = dma.vmem_to_hbm [thread:$0]  %s2220_s30, 128, %s3554_s12, [#allocation6]  }
0x29da   :  { %3002 = dma.done.wait [#allocation6], 128  }
0x29db   :  { %3003 = vsyncadd [#allocation6], 4294967168 }
0x29dc   :  { %3004 = dma.done.wait [#allocation14], 256  }
0x29dd   :  { %3005 = vsyncadd [#allocation14], 4294967040 }
0x29de   :  { %2241 = vsyncpa [#allocation5], 1 }
0x29df   :  { %2242 = vsyncpa [#allocation8], 1 }
0x29e0   :  { %2243 = vsyncpa [#allocation11], 1 }
0x29e1   :  { %2244 = vsyncpa [#allocation6], 1 }
0x29e2   :  { %2245 = vsyncpa [#allocation14], 1 }

</bundles_post_ra>
